<compile_context>
chip_gen: v7x
topology: tpu7x:2x2x1
jax: 0.10.0
libtpu: 0.0.40
codegen_flags: <defaults>
</compile_context>

<pallas_src>
import jax
import jax.numpy as jnp
from jax import lax
from jax.experimental import pallas as pl
from jax.experimental.pallas import tpu as pltpu
import numpy as np

# ----------------------------- model config ---------------------------------
VOCAB_SIZE = 50
EMBEDDING_DIM = 32
HIDDEN_DIM = 32
OUTPUT_DIM = 4
N_LAYERS = 2
BIDIRECTIONAL = True
DROPOUT = 0.0  # eval-mode: identity

SEQ_LEN = 8
BATCH = 8

VOCAB_PAD = ((VOCAB_SIZE + 7) // 8) * 8  # sublane-aligned embedding table


# --------------------------- fused Pallas kernel -----------------------------
def _lstm_fused_kernel(len_ref, ids_ref, emb_ref,
                       w0i_ref, w0h_ref, b0_ref,
                       w1i_ref, w1h_ref, b1_ref,
                       pw_ref, pb_ref,
                       logits_ref):
    """Whole forward pass in one kernel invocation (no grid).

    len_ref : [B, 1]  int32   valid lengths (all >= 1)
    ids_ref : [T*B,1] int32   token ids, time-major flattened
    emb_ref : [Vp, E] f32     (row-)padded embedding table
    w{l}i   : [In_l, 8H] f32  input->gates weights, columns per gate block
                              [fw_i|bw_i|fw_f|bw_f|fw_o|bw_o|fw_g|bw_g]
    w{l}h   : [2H, 8H]  f32   block-diagonal recurrent weights (rows: [h_fw;h_bw])
    b{l}    : [1, 8H]   f32   b_ih + b_hh in the same column order
    pw_ref  : [2H, O], pb_ref: [1, O]   linear head
    logits_ref : [B, O]
    """
    B = len_ref.shape[0]
    TB = ids_ref.shape[0]
    T = TB // B
    H2 = w0h_ref.shape[0]            # 2H
    H = H2 // 2
    H8 = w0h_ref.shape[1]            # 8H
    Vp = emb_ref.shape[0]
    f32 = jnp.float32

    lengths = len_ref[...]                                            # [B, 1] int32

    # ---- hoisted lane-index masks ----
    col8 = lax.broadcasted_iota(jnp.int32, (1, H8), 1)
    is_fw8 = (col8 % (2 * H)) < H                                     # [1, 8H] bool
    col2 = lax.broadcasted_iota(jnp.int32, (1, H2), 1)
    is_fw2 = col2 < H                                                 # [1, 2H] bool

    # ---- packed-sequence validity masks for all steps (hoisted off the chain)
    # fw lanes (<H) look at time t; bw lanes look at time T-1-t.
    masks = []
    for t in range(T):
        t_of_lane = jnp.where(is_fw2, t, T - 1 - t)                   # [1, 2H] int32
        masks.append(lengths > t_of_lane)                             # [B, 2H] bool

    # ---- embedding lookup fused: one-hot @ table on the MXU ----
    ids = ids_ref[...]                                                # [TB, 1] int32
    onehot = (ids == lax.broadcasted_iota(jnp.int32, (TB, Vp), 1)).astype(f32)
    x0 = jnp.dot(onehot, emb_ref[...], preferred_element_type=f32)    # [TB, E]

    def run_layer(x_flat, wi_ref, wh_ref, b_ref, collect_outputs):
        # Hoisted input projection + bias for ALL timesteps (off the chain).
        xproj = jnp.dot(x_flat, wi_ref[...], preferred_element_type=f32) + b_ref[...]
        # Per merged step: fw gate columns use time t, bw gate columns use T-1-t.
        xsteps = [jnp.where(is_fw8,
                            xproj[t * B:(t + 1) * B, :],
                            xproj[(T - 1 - t) * B:(T - t) * B, :])
                  for t in range(T)]
        whh = wh_ref[...]                                             # [2H, 8H]
        h = jnp.zeros((B, H2), f32)                                   # [h_fw | h_bw]
        c = jnp.zeros((B, H2), f32)
        outs = []
        for t in range(T):
            gates = xsteps[t] + jnp.dot(h, whh, preferred_element_type=f32)  # [B, 8H]
            sig = jax.nn.sigmoid(gates[:, :6 * H])                    # i, f, o (fw+bw)
            g_g = jnp.tanh(gates[:, 6 * H:])                          # g (fw+bw)
            i_g = sig[:, :H2]
            f_g = sig[:, H2:2 * H2]
            o_g = sig[:, 2 * H2:3 * H2]
            c_new = f_g * c + i_g * g_g
            h_new = o_g * jnp.tanh(c_new)
            m = masks[t]
            h = jnp.where(m, h_new, h)                                # freeze state at pads
            c = jnp.where(m, c_new, c)
            if collect_outputs:
                outs.append(jnp.where(m, h_new, 0.0))                 # [fw_t | bw_{T-1-t}]
        return h, outs

    # ---------------- layer 0 (fw + bw merged) ----------------
    _, outs0 = run_layer(x0, w0i_ref, w0h_ref, b0_ref, True)

    # Re-time-align layer-0 outputs: y_s = [fw_s | bw_s]; flatten to [T*B, 2H].
    ys = [jnp.where(is_fw2, outs0[t], outs0[T - 1 - t]) for t in range(T)]
    y_flat = jnp.concatenate(ys, axis=0)                              # [TB, 2H]
    # TODO(synk): inter-layer dropout not applied (eval-mode forward only).

    # ---------------- layer 1 (fw + bw merged) ----------------
    h_last, _ = run_layer(y_flat, w1i_ref, w1h_ref, b1_ref, False)
    # h_last == [hidden[-2] | hidden[-1]]   ([B, 2H]) -- no concat needed.

    # ---------------- linear head ----------------
    logits_ref[...] = (jnp.dot(h_last, pw_ref[...], preferred_element_type=f32)
                       + pb_ref[...]).astype(logits_ref.dtype)


# ------------------------------ wrapper ---------------------------------------
def _fused_forward(lengths_col, ids_flat, emb_padded, lstm_kernel, pred_w_T, pred_b):
    B = lengths_col.shape[0]
    O = pred_w_T.shape[1]
    args = [lengths_col, ids_flat, emb_padded,
            lstm_kernel[0]["w_ih"], lstm_kernel[0]["w_hh"], lstm_kernel[0]["b"],
            lstm_kernel[1]["w_ih"], lstm_kernel[1]["w_hh"], lstm_kernel[1]["b"],
            pred_w_T, pred_b]
    return pl.pallas_call(
        _lstm_fused_kernel,
        out_shape=jax.ShapeDtypeStruct((B, O), jnp.float32),
        in_specs=[pl.BlockSpec(memory_space=pltpu.MemorySpace.VMEM) for _ in args],
        out_specs=pl.BlockSpec(memory_space=pltpu.MemorySpace.VMEM),
    )(*args)


@jax.jit
def lstm_forward(text, text_lengths, params):
    """Equivalent of LSTM.forward(text, text_lengths) in eval mode.

    text:         [T, B] int32 token ids
    text_lengths: [B]    int32 valid lengths (all >= 1)
    returns logits [B, OUTPUT_DIM]
    """
    T, B = text.shape
    ids_flat = text.astype(jnp.int32).reshape(T * B, 1)               # time-major flatten
    lengths_col = text_lengths.astype(jnp.int32)[:, None]             # [B, 1]
    return _fused_forward(lengths_col, ids_flat, params["emb_padded"],
                          params["lstm_kernel"], params["pred_w_T"], params["pred_b"])


# ------------------------ pure-JAX reference (check) -------------------------
def _ref_layer_dir(x, mask, w, b):
    T, B, _ = x.shape
    H = HIDDEN_DIM

    def step(carry, inp):
        h, c = carry
        xt, mt = inp
        gates = jnp.concatenate([xt, h], axis=1) @ w + b
        i = jax.nn.sigmoid(gates[:, :H])
        f = jax.nn.sigmoid(gates[:, H:2 * H])
        g = jnp.tanh(gates[:, 2 * H:3 * H])
        o = jax.nn.sigmoid(gates[:, 3 * H:])
        cn = f * c + i * g
        hn = o * jnp.tanh(cn)
        return (mt * hn + (1 - mt) * h, mt * cn + (1 - mt) * c), mt * hn

    init = (jnp.zeros((B, H), jnp.float32), jnp.zeros((B, H), jnp.float32))
    _, outs = lax.scan(step, init, (x, mask))
    return outs


def _ref_forward(text, text_lengths, params):
    T, B = text.shape
    emb = params["embedding"][text]
    mask = (jnp.arange(T)[:, None] < text_lengths[None, :]
            ).astype(jnp.float32)[:, :, None]
    x = emb
    out_fw = out_bw = None
    for layer in range(N_LAYERS):
        p = params["lstm_ref"][layer]
        out_fw = _ref_layer_dir(x, mask, p["w_fw"], p["b_fw"])
        out_bw = _ref_layer_dir(x[::-1], mask[::-1], p["w_bw"], p["b_bw"])[::-1]
        x = jnp.concatenate([out_fw, out_bw], axis=-1)
    h_fw = out_fw[text_lengths - 1, jnp.arange(B)]
    h_bw = out_bw[0]
    hidden = jnp.concatenate([h_fw, h_bw], axis=1)
    return hidden @ params["pred_w_T"] + params["pred_b"]


# ------------------------------ params ---------------------------------------
def _combine_dir_weights(fw, bw, H):
    """Build the kernel-layout combined weights for one layer.

    fw/bw: tuples (w_ih [4H,In], w_hh [4H,H], bias [4H]) in PyTorch gate row
    order (i, f, g, o).  Kernel column order per gate block is (i, f, o, g)
    with fw/bw interleaved: [fw_i|bw_i|fw_f|bw_f|fw_o|bw_o|fw_g|bw_g], so one
    sigmoid covers [:6H] and one tanh covers [6H:8H].
    """
    w_ih_fw, w_hh_fw, b_fw = fw
    w_ih_bw, w_hh_bw, b_bw = bw
    order = (0, 1, 3, 2)   # i, f, o, g  (from PyTorch's i, f, g, o rows)
    z = jnp.zeros((H, H), jnp.float32)
    ih_cols, hh_top, hh_bot, b_cols = [], [], [], []
    for g in order:
        sl = slice(g * H, (g + 1) * H)
        ih_cols += [w_ih_fw[sl].T, w_ih_bw[sl].T]
        hh_top += [w_hh_fw[sl].T, z]
        hh_bot += [z, w_hh_bw[sl].T]
        b_cols += [b_fw[sl], b_bw[sl]]
    w_ih_c = jnp.concatenate(ih_cols, axis=1)                          # [In, 8H]
    w_hh_c = jnp.concatenate([jnp.concatenate(hh_top, axis=1),
                              jnp.concatenate(hh_bot, axis=1)], axis=0)  # [2H, 8H]
    b_c = jnp.concatenate(b_cols)[None, :]                             # [1, 8H]
    return w_ih_c, w_hh_c, b_c


def init_params(key):
    keys = iter(jax.random.split(key, 64))
    H = HIDDEN_DIM
    params = {}

    emb = 0.1 * jax.random.normal(next(keys), (VOCAB_SIZE, EMBEDDING_DIM), jnp.float32)
    params["embedding"] = emb
    params["emb_padded"] = jnp.zeros((VOCAB_PAD, EMBEDDING_DIM),
                                     jnp.float32).at[:VOCAB_SIZE].set(emb)

    ref_layers, kern_layers = [], []
    for layer in range(N_LAYERS):
        in_dim = EMBEDDING_DIM if layer == 0 else 2 * H
        scale = 1.0 / np.sqrt(H)
        ref_p, raw = {}, {}
        for d in ("fw", "bw"):
            w_ih = scale * jax.random.normal(next(keys), (4 * H, in_dim), jnp.float32)
            w_hh = scale * jax.random.normal(next(keys), (4 * H, H), jnp.float32)
            b_ih = scale * jax.random.normal(next(keys), (4 * H,), jnp.float32)
            b_hh = scale * jax.random.normal(next(keys), (4 * H,), jnp.float32)
            raw[d] = (w_ih, w_hh, b_ih + b_hh)
            # reference layout: merged, transposed [In+H, 4H], gate order (i,f,g,o)
            ref_p[f"w_{d}"] = jnp.concatenate([w_ih.T, w_hh.T], axis=0)
            ref_p[f"b_{d}"] = (b_ih + b_hh)[None, :]
        ref_layers.append(ref_p)
        w_ih_c, w_hh_c, b_c = _combine_dir_weights(raw["fw"], raw["bw"], H)
        kern_layers.append({"w_ih": w_ih_c, "w_hh": w_hh_c, "b": b_c})
    params["lstm_ref"] = ref_layers
    params["lstm_kernel"] = kern_layers

    pw = (1.0 / np.sqrt(2 * H)) * jax.random.normal(
        next(keys), (OUTPUT_DIM, 2 * H), jnp.float32)
    pb = (1.0 / np.sqrt(2 * H)) * jax.random.normal(
        next(keys), (OUTPUT_DIM,), jnp.float32)
    params["pred_w_T"] = jnp.asarray(pw.T)                             # [2H, O]
    params["pred_b"] = pb[None, :]                                     # [1, O]
    return params


# -------------------------------- main ----------------------------------------
if __name__ == "__main__":
    key = jax.random.PRNGKey(0)
    k_par, k_txt = jax.random.split(key)

    params = init_params(k_par)

    text = jax.random.randint(k_txt, (SEQ_LEN, BATCH), 0, VOCAB_SIZE, jnp.int32)
    # descending lengths, all >= 1 (pack_padded_sequence with enforce_sorted=True)
    text_lengths = jnp.array([8, 7, 6, 5, 5, 4, 3, 2], dtype=jnp.int32)
    pad_mask = (jnp.arange(SEQ_LEN)[:, None] < text_lengths[None, :])
    text = jnp.where(pad_mask, text, 0)

    logits = lstm_forward(text, text_lengths, params)
    jax.block_until_ready(logits)

    ref = _ref_forward(text, text_lengths, params)
    np.testing.assert_allclose(np.asarray(logits), np.asarray(ref),
                               rtol=1e-4, atol=1e-4)

    print("KERNEL_OK")
</pallas_src>

<mosaic_0001>
module attributes {stable_mosaic.version = 11 : i64} {
  func.func @_lstm_fused_kernel(%arg0: memref<8x1xi32, #tpu.memory_space<vmem>>, %arg1: memref<64x1xi32, #tpu.memory_space<vmem>>, %arg2: memref<56x32xf32, #tpu.memory_space<vmem>>, %arg3: memref<32x256xf32, #tpu.memory_space<vmem>>, %arg4: memref<64x256xf32, #tpu.memory_space<vmem>>, %arg5: memref<1x256xf32, #tpu.memory_space<vmem>>, %arg6: memref<64x256xf32, #tpu.memory_space<vmem>>, %arg7: memref<64x256xf32, #tpu.memory_space<vmem>>, %arg8: memref<1x256xf32, #tpu.memory_space<vmem>>, %arg9: memref<64x4xf32, #tpu.memory_space<vmem>>, %arg10: memref<1x4xf32, #tpu.memory_space<vmem>>, %arg11: memref<8x4xf32, #tpu.memory_space<vmem>>) attributes {dimension_semantics = [], scalar_prefetch = 0 : i64, scratch_operands = 0 : i64, tpu.core_type = #tpu.core_type<tc>} {
    %c0 = arith.constant 0 : index
    %c0_0 = arith.constant 0 : index
    %0 = vector.load %arg0[%c0, %c0_0] : memref<8x1xi32, #tpu.memory_space<vmem>>, vector<8x1xi32>
    %1 = tpu.iota {dimensions = array<i32: 1>} : vector<1x256xi32>
    %c64_i32 = arith.constant 64 : i32
    %c0_i32 = arith.constant 0 : i32
    %2 = arith.cmpi eq, %c64_i32, %c0_i32 : i32
    %c1_i32 = arith.constant 1 : i32
    %3 = arith.select %2, %c1_i32, %c64_i32 : i32
    %4 = vector.broadcast %3 : i32 to vector<1x256xi32>
    %5 = arith.remsi %1, %4 : vector<1x256xi32>
    %c0_i32_1 = arith.constant 0 : i32
    %6 = vector.broadcast %c0_i32_1 : i32 to vector<1x256xi32>
    %7 = arith.cmpi ne, %5, %6 : vector<1x256xi32>
    %c0_i32_2 = arith.constant 0 : i32
    %8 = vector.broadcast %c0_i32_2 : i32 to vector<1x256xi32>
    %9 = arith.cmpi slt, %5, %8 : vector<1x256xi32>
    %c0_i32_3 = arith.constant 0 : i32
    %10 = arith.cmpi slt, %3, %c0_i32_3 : i32
    %11 = vector.broadcast %10 : i1 to vector<1x256xi1>
    %12 = vector.broadcast %11 : vector<1x256xi1> to vector<1x256xi1>
    %13 = arith.xori %9, %12 : vector<1x256xi1>
    %14 = arith.andi %13, %7 : vector<1x256xi1>
    %15 = vector.broadcast %3 : i32 to vector<1x256xi32>
    %16 = arith.addi %5, %15 : vector<1x256xi32>
    %17 = arith.select %14, %16, %5 : vector<1x256xi1>, vector<1x256xi32>
    %c32_i32 = arith.constant 32 : i32
    %18 = vector.broadcast %c32_i32 : i32 to vector<1x256xi32>
    %19 = arith.cmpi slt, %17, %18 : vector<1x256xi32>
    %20 = tpu.iota {dimensions = array<i32: 1>} : vector<1x64xi32>
    %c32_i32_4 = arith.constant 32 : i32
    %21 = vector.broadcast %c32_i32_4 : i32 to vector<1x64xi32>
    %22 = arith.cmpi slt, %20, %21 : vector<1x64xi32>
    %c0_i32_5 = arith.constant 0 : i32
    %c7_i32 = arith.constant 7 : i32
    %23 = vector.broadcast %c0_i32_5 : i32 to vector<1x64xi32>
    %24 = vector.broadcast %c7_i32 : i32 to vector<1x64xi32>
    %25 = arith.select %22, %23, %24 : vector<1x64xi1>, vector<1x64xi32>
    %26 = vector.broadcast %0 : vector<8x1xi32> to vector<8x64xi32>
    %27 = vector.broadcast %25 : vector<1x64xi32> to vector<8x64xi32>
    %28 = arith.cmpi sgt, %26, %27 : vector<8x64xi32>
    %c1_i32_6 = arith.constant 1 : i32
    %c6_i32 = arith.constant 6 : i32
    %29 = vector.broadcast %c1_i32_6 : i32 to vector<1x64xi32>
    %30 = vector.broadcast %c6_i32 : i32 to vector<1x64xi32>
    %31 = arith.select %22, %29, %30 : vector<1x64xi1>, vector<1x64xi32>
    %32 = vector.broadcast %0 : vector<8x1xi32> to vector<8x64xi32>
    %33 = vector.broadcast %31 : vector<1x64xi32> to vector<8x64xi32>
    %34 = arith.cmpi sgt, %32, %33 : vector<8x64xi32>
    %c2_i32 = arith.constant 2 : i32
    %c5_i32 = arith.constant 5 : i32
    %35 = vector.broadcast %c2_i32 : i32 to vector<1x64xi32>
    %36 = vector.broadcast %c5_i32 : i32 to vector<1x64xi32>
    %37 = arith.select %22, %35, %36 : vector<1x64xi1>, vector<1x64xi32>
    %38 = vector.broadcast %0 : vector<8x1xi32> to vector<8x64xi32>
    %39 = vector.broadcast %37 : vector<1x64xi32> to vector<8x64xi32>
    %40 = arith.cmpi sgt, %38, %39 : vector<8x64xi32>
    %c3_i32 = arith.constant 3 : i32
    %c4_i32 = arith.constant 4 : i32
    %41 = vector.broadcast %c3_i32 : i32 to vector<1x64xi32>
    %42 = vector.broadcast %c4_i32 : i32 to vector<1x64xi32>
    %43 = arith.select %22, %41, %42 : vector<1x64xi1>, vector<1x64xi32>
    %44 = vector.broadcast %0 : vector<8x1xi32> to vector<8x64xi32>
    %45 = vector.broadcast %43 : vector<1x64xi32> to vector<8x64xi32>
    %46 = arith.cmpi sgt, %44, %45 : vector<8x64xi32>
    %c4_i32_7 = arith.constant 4 : i32
    %c3_i32_8 = arith.constant 3 : i32
    %47 = vector.broadcast %c4_i32_7 : i32 to vector<1x64xi32>
    %48 = vector.broadcast %c3_i32_8 : i32 to vector<1x64xi32>
    %49 = arith.select %22, %47, %48 : vector<1x64xi1>, vector<1x64xi32>
    %50 = vector.broadcast %0 : vector<8x1xi32> to vector<8x64xi32>
    %51 = vector.broadcast %49 : vector<1x64xi32> to vector<8x64xi32>
    %52 = arith.cmpi sgt, %50, %51 : vector<8x64xi32>
    %c5_i32_9 = arith.constant 5 : i32
    %c2_i32_10 = arith.constant 2 : i32
    %53 = vector.broadcast %c5_i32_9 : i32 to vector<1x64xi32>
    %54 = vector.broadcast %c2_i32_10 : i32 to vector<1x64xi32>
    %55 = arith.select %22, %53, %54 : vector<1x64xi1>, vector<1x64xi32>
    %56 = vector.broadcast %0 : vector<8x1xi32> to vector<8x64xi32>
    %57 = vector.broadcast %55 : vector<1x64xi32> to vector<8x64xi32>
    %58 = arith.cmpi sgt, %56, %57 : vector<8x64xi32>
    %c6_i32_11 = arith.constant 6 : i32
    %c1_i32_12 = arith.constant 1 : i32
    %59 = vector.broadcast %c6_i32_11 : i32 to vector<1x64xi32>
    %60 = vector.broadcast %c1_i32_12 : i32 to vector<1x64xi32>
    %61 = arith.select %22, %59, %60 : vector<1x64xi1>, vector<1x64xi32>
    %62 = vector.broadcast %0 : vector<8x1xi32> to vector<8x64xi32>
    %63 = vector.broadcast %61 : vector<1x64xi32> to vector<8x64xi32>
    %64 = arith.cmpi sgt, %62, %63 : vector<8x64xi32>
    %c7_i32_13 = arith.constant 7 : i32
    %c0_i32_14 = arith.constant 0 : i32
    %65 = vector.broadcast %c7_i32_13 : i32 to vector<1x64xi32>
    %66 = vector.broadcast %c0_i32_14 : i32 to vector<1x64xi32>
    %67 = arith.select %22, %65, %66 : vector<1x64xi1>, vector<1x64xi32>
    %68 = vector.broadcast %0 : vector<8x1xi32> to vector<8x64xi32>
    %69 = vector.broadcast %67 : vector<1x64xi32> to vector<8x64xi32>
    %70 = arith.cmpi sgt, %68, %69 : vector<8x64xi32>
    %c0_15 = arith.constant 0 : index
    %c0_16 = arith.constant 0 : index
    %71 = vector.load %arg1[%c0_15, %c0_16] : memref<64x1xi32, #tpu.memory_space<vmem>>, vector<64x1xi32>
    %72 = tpu.iota {dimensions = array<i32: 1>} : vector<64x56xi32>
    %73 = vector.broadcast %71 : vector<64x1xi32> to vector<64x56xi32>
    %74 = arith.cmpi eq, %73, %72 : vector<64x56xi32>
    %75 = arith.extui %74 : vector<64x56xi1> to vector<64x56xi32>
    %76 = arith.sitofp %75 : vector<64x56xi32> to vector<64x56xf32>
    %c0_17 = arith.constant 0 : index
    %c0_18 = arith.constant 0 : index
    %77 = vector.load %arg2[%c0_17, %c0_18] : memref<56x32xf32, #tpu.memory_space<vmem>>, vector<56x32xf32>
    %cst = arith.constant dense<0.000000e+00> : vector<64x32xf32>
    %78 = tpu.matmul %76, %77, %cst {dimension_numbers = #tpu.dot_dimension_numbers<[1], [0], [0], [1], [0, 0, 1, 1], [], []>} : vector<64x56xf32>, vector<56x32xf32>, vector<64x32xf32> -> vector<64x32xf32>
    %c0_19 = arith.constant 0 : index
    %c0_20 = arith.constant 0 : index
    %79 = vector.load %arg3[%c0_19, %c0_20] : memref<32x256xf32, #tpu.memory_space<vmem>>, vector<32x256xf32>
    %cst_21 = arith.constant dense<0.000000e+00> : vector<64x256xf32>
    %80 = tpu.matmul %78, %79, %cst_21 {dimension_numbers = #tpu.dot_dimension_numbers<[1], [0], [0], [1], [0, 0, 1, 1], [], []>} : vector<64x32xf32>, vector<32x256xf32>, vector<64x256xf32> -> vector<64x256xf32>
    %c0_22 = arith.constant 0 : index
    %c0_23 = arith.constant 0 : index
    %81 = vector.load %arg5[%c0_22, %c0_23] : memref<1x256xf32, #tpu.memory_space<vmem>>, vector<1x256xf32>
    %82 = vector.broadcast %81 : vector<1x256xf32> to vector<64x256xf32>
    %83 = arith.addf %80, %82 : vector<64x256xf32>
    %84 = vector.extract_strided_slice %83 {offsets = [0, 0], sizes = [8, 256], strides = [1, 1]} : vector<64x256xf32> to vector<8x256xf32>
    %85 = vector.extract_strided_slice %83 {offsets = [56, 0], sizes = [8, 256], strides = [1, 1]} : vector<64x256xf32> to vector<8x256xf32>
    %86 = vector.shape_cast %19 : vector<1x256xi1> to vector<1x256xi1>
    %87 = vector.broadcast %86 : vector<1x256xi1> to vector<8x256xi1>
    %88 = arith.select %87, %84, %85 : vector<8x256xi1>, vector<8x256xf32>
    %89 = vector.extract_strided_slice %83 {offsets = [8, 0], sizes = [8, 256], strides = [1, 1]} : vector<64x256xf32> to vector<8x256xf32>
    %90 = vector.extract_strided_slice %83 {offsets = [48, 0], sizes = [8, 256], strides = [1, 1]} : vector<64x256xf32> to vector<8x256xf32>
    %91 = vector.shape_cast %19 : vector<1x256xi1> to vector<1x256xi1>
    %92 = vector.broadcast %91 : vector<1x256xi1> to vector<8x256xi1>
    %93 = arith.select %92, %89, %90 : vector<8x256xi1>, vector<8x256xf32>
    %94 = vector.extract_strided_slice %83 {offsets = [16, 0], sizes = [8, 256], strides = [1, 1]} : vector<64x256xf32> to vector<8x256xf32>
    %95 = vector.extract_strided_slice %83 {offsets = [40, 0], sizes = [8, 256], strides = [1, 1]} : vector<64x256xf32> to vector<8x256xf32>
    %96 = vector.shape_cast %19 : vector<1x256xi1> to vector<1x256xi1>
    %97 = vector.broadcast %96 : vector<1x256xi1> to vector<8x256xi1>
    %98 = arith.select %97, %94, %95 : vector<8x256xi1>, vector<8x256xf32>
    %99 = vector.extract_strided_slice %83 {offsets = [24, 0], sizes = [8, 256], strides = [1, 1]} : vector<64x256xf32> to vector<8x256xf32>
    %100 = vector.extract_strided_slice %83 {offsets = [32, 0], sizes = [8, 256], strides = [1, 1]} : vector<64x256xf32> to vector<8x256xf32>
    %101 = vector.shape_cast %19 : vector<1x256xi1> to vector<1x256xi1>
    %102 = vector.broadcast %101 : vector<1x256xi1> to vector<8x256xi1>
    %103 = arith.select %102, %99, %100 : vector<8x256xi1>, vector<8x256xf32>
    %104 = vector.extract_strided_slice %83 {offsets = [32, 0], sizes = [8, 256], strides = [1, 1]} : vector<64x256xf32> to vector<8x256xf32>
    %105 = vector.extract_strided_slice %83 {offsets = [24, 0], sizes = [8, 256], strides = [1, 1]} : vector<64x256xf32> to vector<8x256xf32>
    %106 = vector.shape_cast %19 : vector<1x256xi1> to vector<1x256xi1>
    %107 = vector.broadcast %106 : vector<1x256xi1> to vector<8x256xi1>
    %108 = arith.select %107, %104, %105 : vector<8x256xi1>, vector<8x256xf32>
    %109 = vector.extract_strided_slice %83 {offsets = [40, 0], sizes = [8, 256], strides = [1, 1]} : vector<64x256xf32> to vector<8x256xf32>
    %110 = vector.extract_strided_slice %83 {offsets = [16, 0], sizes = [8, 256], strides = [1, 1]} : vector<64x256xf32> to vector<8x256xf32>
    %111 = vector.shape_cast %19 : vector<1x256xi1> to vector<1x256xi1>
    %112 = vector.broadcast %111 : vector<1x256xi1> to vector<8x256xi1>
    %113 = arith.select %112, %109, %110 : vector<8x256xi1>, vector<8x256xf32>
    %114 = vector.extract_strided_slice %83 {offsets = [48, 0], sizes = [8, 256], strides = [1, 1]} : vector<64x256xf32> to vector<8x256xf32>
    %115 = vector.extract_strided_slice %83 {offsets = [8, 0], sizes = [8, 256], strides = [1, 1]} : vector<64x256xf32> to vector<8x256xf32>
    %116 = vector.shape_cast %19 : vector<1x256xi1> to vector<1x256xi1>
    %117 = vector.broadcast %116 : vector<1x256xi1> to vector<8x256xi1>
    %118 = arith.select %117, %114, %115 : vector<8x256xi1>, vector<8x256xf32>
    %119 = vector.extract_strided_slice %83 {offsets = [56, 0], sizes = [8, 256], strides = [1, 1]} : vector<64x256xf32> to vector<8x256xf32>
    %120 = vector.extract_strided_slice %83 {offsets = [0, 0], sizes = [8, 256], strides = [1, 1]} : vector<64x256xf32> to vector<8x256xf32>
    %121 = vector.shape_cast %19 : vector<1x256xi1> to vector<1x256xi1>
    %122 = vector.broadcast %121 : vector<1x256xi1> to vector<8x256xi1>
    %123 = arith.select %122, %119, %120 : vector<8x256xi1>, vector<8x256xf32>
    %c0_24 = arith.constant 0 : index
    %c0_25 = arith.constant 0 : index
    %124 = vector.load %arg4[%c0_24, %c0_25] : memref<64x256xf32, #tpu.memory_space<vmem>>, vector<64x256xf32>
    %cst_26 = arith.constant 0.000000e+00 : f32
    %125 = vector.broadcast %cst_26 : f32 to vector<8x64xf32>
    %cst_27 = arith.constant 0.000000e+00 : f32
    %126 = vector.broadcast %cst_27 : f32 to vector<8x64xf32>
    %cst_28 = arith.constant dense<0.000000e+00> : vector<8x256xf32>
    %127 = tpu.matmul %125, %124, %cst_28 {dimension_numbers = #tpu.dot_dimension_numbers<[1], [0], [0], [1], [0, 0, 1, 1], [], []>} : vector<8x64xf32>, vector<64x256xf32>, vector<8x256xf32> -> vector<8x256xf32>
    %128 = arith.addf %88, %127 : vector<8x256xf32>
    %129 = vector.extract_strided_slice %128 {offsets = [0, 0], sizes = [8, 192], strides = [1, 1]} : vector<8x256xf32> to vector<8x192xf32>
    %130 = arith.negf %129 : vector<8x192xf32>
    %131 = math.exp %130 : vector<8x192xf32>
    %cst_29 = arith.constant 1.000000e+00 : f32
    %132 = vector.broadcast %cst_29 : f32 to vector<8x192xf32>
    %133 = arith.addf %132, %131 : vector<8x192xf32>
    %134 = arith.divf %132, %133 : vector<8x192xf32>
    %135 = vector.extract_strided_slice %128 {offsets = [0, 192], sizes = [8, 64], strides = [1, 1]} : vector<8x256xf32> to vector<8x64xf32>
    %136 = math.tanh %135 : vector<8x64xf32>
    %137 = vector.extract_strided_slice %134 {offsets = [0, 0], sizes = [8, 64], strides = [1, 1]} : vector<8x192xf32> to vector<8x64xf32>
    %138 = vector.extract_strided_slice %134 {offsets = [0, 64], sizes = [8, 64], strides = [1, 1]} : vector<8x192xf32> to vector<8x64xf32>
    %139 = vector.extract_strided_slice %134 {offsets = [0, 128], sizes = [8, 64], strides = [1, 1]} : vector<8x192xf32> to vector<8x64xf32>
    %140 = arith.mulf %138, %126 : vector<8x64xf32>
    %141 = arith.mulf %137, %136 : vector<8x64xf32>
    %142 = arith.addf %140, %141 : vector<8x64xf32>
    %143 = math.tanh %142 : vector<8x64xf32>
    %144 = arith.mulf %139, %143 : vector<8x64xf32>
    %145 = arith.select %28, %144, %125 : vector<8x64xi1>, vector<8x64xf32>
    %146 = arith.select %28, %142, %126 : vector<8x64xi1>, vector<8x64xf32>
    %cst_30 = arith.constant 0.000000e+00 : f32
    %147 = vector.broadcast %cst_30 : f32 to vector<8x64xf32>
    %148 = arith.select %28, %144, %147 : vector<8x64xi1>, vector<8x64xf32>
    %cst_31 = arith.constant dense<0.000000e+00> : vector<8x256xf32>
    %149 = tpu.matmul %145, %124, %cst_31 {dimension_numbers = #tpu.dot_dimension_numbers<[1], [0], [0], [1], [0, 0, 1, 1], [], []>} : vector<8x64xf32>, vector<64x256xf32>, vector<8x256xf32> -> vector<8x256xf32>
    %150 = arith.addf %93, %149 : vector<8x256xf32>
    %151 = vector.extract_strided_slice %150 {offsets = [0, 0], sizes = [8, 192], strides = [1, 1]} : vector<8x256xf32> to vector<8x192xf32>
    %152 = arith.negf %151 : vector<8x192xf32>
    %153 = math.exp %152 : vector<8x192xf32>
    %cst_32 = arith.constant 1.000000e+00 : f32
    %154 = vector.broadcast %cst_32 : f32 to vector<8x192xf32>
    %155 = arith.addf %154, %153 : vector<8x192xf32>
    %156 = arith.divf %154, %155 : vector<8x192xf32>
    %157 = vector.extract_strided_slice %150 {offsets = [0, 192], sizes = [8, 64], strides = [1, 1]} : vector<8x256xf32> to vector<8x64xf32>
    %158 = math.tanh %157 : vector<8x64xf32>
    %159 = vector.extract_strided_slice %156 {offsets = [0, 0], sizes = [8, 64], strides = [1, 1]} : vector<8x192xf32> to vector<8x64xf32>
    %160 = vector.extract_strided_slice %156 {offsets = [0, 64], sizes = [8, 64], strides = [1, 1]} : vector<8x192xf32> to vector<8x64xf32>
    %161 = vector.extract_strided_slice %156 {offsets = [0, 128], sizes = [8, 64], strides = [1, 1]} : vector<8x192xf32> to vector<8x64xf32>
    %162 = arith.mulf %160, %146 : vector<8x64xf32>
    %163 = arith.mulf %159, %158 : vector<8x64xf32>
    %164 = arith.addf %162, %163 : vector<8x64xf32>
    %165 = math.tanh %164 : vector<8x64xf32>
    %166 = arith.mulf %161, %165 : vector<8x64xf32>
    %167 = arith.select %34, %166, %145 : vector<8x64xi1>, vector<8x64xf32>
    %168 = arith.select %34, %164, %146 : vector<8x64xi1>, vector<8x64xf32>
    %cst_33 = arith.constant 0.000000e+00 : f32
    %169 = vector.broadcast %cst_33 : f32 to vector<8x64xf32>
    %170 = arith.select %34, %166, %169 : vector<8x64xi1>, vector<8x64xf32>
    %cst_34 = arith.constant dense<0.000000e+00> : vector<8x256xf32>
    %171 = tpu.matmul %167, %124, %cst_34 {dimension_numbers = #tpu.dot_dimension_numbers<[1], [0], [0], [1], [0, 0, 1, 1], [], []>} : vector<8x64xf32>, vector<64x256xf32>, vector<8x256xf32> -> vector<8x256xf32>
    %172 = arith.addf %98, %171 : vector<8x256xf32>
    %173 = vector.extract_strided_slice %172 {offsets = [0, 0], sizes = [8, 192], strides = [1, 1]} : vector<8x256xf32> to vector<8x192xf32>
    %174 = arith.negf %173 : vector<8x192xf32>
    %175 = math.exp %174 : vector<8x192xf32>
    %cst_35 = arith.constant 1.000000e+00 : f32
    %176 = vector.broadcast %cst_35 : f32 to vector<8x192xf32>
    %177 = arith.addf %176, %175 : vector<8x192xf32>
    %178 = arith.divf %176, %177 : vector<8x192xf32>
    %179 = vector.extract_strided_slice %172 {offsets = [0, 192], sizes = [8, 64], strides = [1, 1]} : vector<8x256xf32> to vector<8x64xf32>
    %180 = math.tanh %179 : vector<8x64xf32>
    %181 = vector.extract_strided_slice %178 {offsets = [0, 0], sizes = [8, 64], strides = [1, 1]} : vector<8x192xf32> to vector<8x64xf32>
    %182 = vector.extract_strided_slice %178 {offsets = [0, 64], sizes = [8, 64], strides = [1, 1]} : vector<8x192xf32> to vector<8x64xf32>
    %183 = vector.extract_strided_slice %178 {offsets = [0, 128], sizes = [8, 64], strides = [1, 1]} : vector<8x192xf32> to vector<8x64xf32>
    %184 = arith.mulf %182, %168 : vector<8x64xf32>
    %185 = arith.mulf %181, %180 : vector<8x64xf32>
    %186 = arith.addf %184, %185 : vector<8x64xf32>
    %187 = math.tanh %186 : vector<8x64xf32>
    %188 = arith.mulf %183, %187 : vector<8x64xf32>
    %189 = arith.select %40, %188, %167 : vector<8x64xi1>, vector<8x64xf32>
    %190 = arith.select %40, %186, %168 : vector<8x64xi1>, vector<8x64xf32>
    %cst_36 = arith.constant 0.000000e+00 : f32
    %191 = vector.broadcast %cst_36 : f32 to vector<8x64xf32>
    %192 = arith.select %40, %188, %191 : vector<8x64xi1>, vector<8x64xf32>
    %cst_37 = arith.constant dense<0.000000e+00> : vector<8x256xf32>
    %193 = tpu.matmul %189, %124, %cst_37 {dimension_numbers = #tpu.dot_dimension_numbers<[1], [0], [0], [1], [0, 0, 1, 1], [], []>} : vector<8x64xf32>, vector<64x256xf32>, vector<8x256xf32> -> vector<8x256xf32>
    %194 = arith.addf %103, %193 : vector<8x256xf32>
    %195 = vector.extract_strided_slice %194 {offsets = [0, 0], sizes = [8, 192], strides = [1, 1]} : vector<8x256xf32> to vector<8x192xf32>
    %196 = arith.negf %195 : vector<8x192xf32>
    %197 = math.exp %196 : vector<8x192xf32>
    %cst_38 = arith.constant 1.000000e+00 : f32
    %198 = vector.broadcast %cst_38 : f32 to vector<8x192xf32>
    %199 = arith.addf %198, %197 : vector<8x192xf32>
    %200 = arith.divf %198, %199 : vector<8x192xf32>
    %201 = vector.extract_strided_slice %194 {offsets = [0, 192], sizes = [8, 64], strides = [1, 1]} : vector<8x256xf32> to vector<8x64xf32>
    %202 = math.tanh %201 : vector<8x64xf32>
    %203 = vector.extract_strided_slice %200 {offsets = [0, 0], sizes = [8, 64], strides = [1, 1]} : vector<8x192xf32> to vector<8x64xf32>
    %204 = vector.extract_strided_slice %200 {offsets = [0, 64], sizes = [8, 64], strides = [1, 1]} : vector<8x192xf32> to vector<8x64xf32>
    %205 = vector.extract_strided_slice %200 {offsets = [0, 128], sizes = [8, 64], strides = [1, 1]} : vector<8x192xf32> to vector<8x64xf32>
    %206 = arith.mulf %204, %190 : vector<8x64xf32>
    %207 = arith.mulf %203, %202 : vector<8x64xf32>
    %208 = arith.addf %206, %207 : vector<8x64xf32>
    %209 = math.tanh %208 : vector<8x64xf32>
    %210 = arith.mulf %205, %209 : vector<8x64xf32>
    %211 = arith.select %46, %210, %189 : vector<8x64xi1>, vector<8x64xf32>
    %212 = arith.select %46, %208, %190 : vector<8x64xi1>, vector<8x64xf32>
    %cst_39 = arith.constant 0.000000e+00 : f32
    %213 = vector.broadcast %cst_39 : f32 to vector<8x64xf32>
    %214 = arith.select %46, %210, %213 : vector<8x64xi1>, vector<8x64xf32>
    %cst_40 = arith.constant dense<0.000000e+00> : vector<8x256xf32>
    %215 = tpu.matmul %211, %124, %cst_40 {dimension_numbers = #tpu.dot_dimension_numbers<[1], [0], [0], [1], [0, 0, 1, 1], [], []>} : vector<8x64xf32>, vector<64x256xf32>, vector<8x256xf32> -> vector<8x256xf32>
    %216 = arith.addf %108, %215 : vector<8x256xf32>
    %217 = vector.extract_strided_slice %216 {offsets = [0, 0], sizes = [8, 192], strides = [1, 1]} : vector<8x256xf32> to vector<8x192xf32>
    %218 = arith.negf %217 : vector<8x192xf32>
    %219 = math.exp %218 : vector<8x192xf32>
    %cst_41 = arith.constant 1.000000e+00 : f32
    %220 = vector.broadcast %cst_41 : f32 to vector<8x192xf32>
    %221 = arith.addf %220, %219 : vector<8x192xf32>
    %222 = arith.divf %220, %221 : vector<8x192xf32>
    %223 = vector.extract_strided_slice %216 {offsets = [0, 192], sizes = [8, 64], strides = [1, 1]} : vector<8x256xf32> to vector<8x64xf32>
    %224 = math.tanh %223 : vector<8x64xf32>
    %225 = vector.extract_strided_slice %222 {offsets = [0, 0], sizes = [8, 64], strides = [1, 1]} : vector<8x192xf32> to vector<8x64xf32>
    %226 = vector.extract_strided_slice %222 {offsets = [0, 64], sizes = [8, 64], strides = [1, 1]} : vector<8x192xf32> to vector<8x64xf32>
    %227 = vector.extract_strided_slice %222 {offsets = [0, 128], sizes = [8, 64], strides = [1, 1]} : vector<8x192xf32> to vector<8x64xf32>
    %228 = arith.mulf %226, %212 : vector<8x64xf32>
    %229 = arith.mulf %225, %224 : vector<8x64xf32>
    %230 = arith.addf %228, %229 : vector<8x64xf32>
    %231 = math.tanh %230 : vector<8x64xf32>
    %232 = arith.mulf %227, %231 : vector<8x64xf32>
    %233 = arith.select %52, %232, %211 : vector<8x64xi1>, vector<8x64xf32>
    %234 = arith.select %52, %230, %212 : vector<8x64xi1>, vector<8x64xf32>
    %cst_42 = arith.constant 0.000000e+00 : f32
    %235 = vector.broadcast %cst_42 : f32 to vector<8x64xf32>
    %236 = arith.select %52, %232, %235 : vector<8x64xi1>, vector<8x64xf32>
    %cst_43 = arith.constant dense<0.000000e+00> : vector<8x256xf32>
    %237 = tpu.matmul %233, %124, %cst_43 {dimension_numbers = #tpu.dot_dimension_numbers<[1], [0], [0], [1], [0, 0, 1, 1], [], []>} : vector<8x64xf32>, vector<64x256xf32>, vector<8x256xf32> -> vector<8x256xf32>
    %238 = arith.addf %113, %237 : vector<8x256xf32>
    %239 = vector.extract_strided_slice %238 {offsets = [0, 0], sizes = [8, 192], strides = [1, 1]} : vector<8x256xf32> to vector<8x192xf32>
    %240 = arith.negf %239 : vector<8x192xf32>
    %241 = math.exp %240 : vector<8x192xf32>
    %cst_44 = arith.constant 1.000000e+00 : f32
    %242 = vector.broadcast %cst_44 : f32 to vector<8x192xf32>
    %243 = arith.addf %242, %241 : vector<8x192xf32>
    %244 = arith.divf %242, %243 : vector<8x192xf32>
    %245 = vector.extract_strided_slice %238 {offsets = [0, 192], sizes = [8, 64], strides = [1, 1]} : vector<8x256xf32> to vector<8x64xf32>
    %246 = math.tanh %245 : vector<8x64xf32>
    %247 = vector.extract_strided_slice %244 {offsets = [0, 0], sizes = [8, 64], strides = [1, 1]} : vector<8x192xf32> to vector<8x64xf32>
    %248 = vector.extract_strided_slice %244 {offsets = [0, 64], sizes = [8, 64], strides = [1, 1]} : vector<8x192xf32> to vector<8x64xf32>
    %249 = vector.extract_strided_slice %244 {offsets = [0, 128], sizes = [8, 64], strides = [1, 1]} : vector<8x192xf32> to vector<8x64xf32>
    %250 = arith.mulf %248, %234 : vector<8x64xf32>
    %251 = arith.mulf %247, %246 : vector<8x64xf32>
    %252 = arith.addf %250, %251 : vector<8x64xf32>
    %253 = math.tanh %252 : vector<8x64xf32>
    %254 = arith.mulf %249, %253 : vector<8x64xf32>
    %255 = arith.select %58, %254, %233 : vector<8x64xi1>, vector<8x64xf32>
    %256 = arith.select %58, %252, %234 : vector<8x64xi1>, vector<8x64xf32>
    %cst_45 = arith.constant 0.000000e+00 : f32
    %257 = vector.broadcast %cst_45 : f32 to vector<8x64xf32>
    %258 = arith.select %58, %254, %257 : vector<8x64xi1>, vector<8x64xf32>
    %cst_46 = arith.constant dense<0.000000e+00> : vector<8x256xf32>
    %259 = tpu.matmul %255, %124, %cst_46 {dimension_numbers = #tpu.dot_dimension_numbers<[1], [0], [0], [1], [0, 0, 1, 1], [], []>} : vector<8x64xf32>, vector<64x256xf32>, vector<8x256xf32> -> vector<8x256xf32>
    %260 = arith.addf %118, %259 : vector<8x256xf32>
    %261 = vector.extract_strided_slice %260 {offsets = [0, 0], sizes = [8, 192], strides = [1, 1]} : vector<8x256xf32> to vector<8x192xf32>
    %262 = arith.negf %261 : vector<8x192xf32>
    %263 = math.exp %262 : vector<8x192xf32>
    %cst_47 = arith.constant 1.000000e+00 : f32
    %264 = vector.broadcast %cst_47 : f32 to vector<8x192xf32>
    %265 = arith.addf %264, %263 : vector<8x192xf32>
    %266 = arith.divf %264, %265 : vector<8x192xf32>
    %267 = vector.extract_strided_slice %260 {offsets = [0, 192], sizes = [8, 64], strides = [1, 1]} : vector<8x256xf32> to vector<8x64xf32>
    %268 = math.tanh %267 : vector<8x64xf32>
    %269 = vector.extract_strided_slice %266 {offsets = [0, 0], sizes = [8, 64], strides = [1, 1]} : vector<8x192xf32> to vector<8x64xf32>
    %270 = vector.extract_strided_slice %266 {offsets = [0, 64], sizes = [8, 64], strides = [1, 1]} : vector<8x192xf32> to vector<8x64xf32>
    %271 = vector.extract_strided_slice %266 {offsets = [0, 128], sizes = [8, 64], strides = [1, 1]} : vector<8x192xf32> to vector<8x64xf32>
    %272 = arith.mulf %270, %256 : vector<8x64xf32>
    %273 = arith.mulf %269, %268 : vector<8x64xf32>
    %274 = arith.addf %272, %273 : vector<8x64xf32>
    %275 = math.tanh %274 : vector<8x64xf32>
    %276 = arith.mulf %271, %275 : vector<8x64xf32>
    %277 = arith.select %64, %276, %255 : vector<8x64xi1>, vector<8x64xf32>
    %278 = arith.select %64, %274, %256 : vector<8x64xi1>, vector<8x64xf32>
    %cst_48 = arith.constant 0.000000e+00 : f32
    %279 = vector.broadcast %cst_48 : f32 to vector<8x64xf32>
    %280 = arith.select %64, %276, %279 : vector<8x64xi1>, vector<8x64xf32>
    %cst_49 = arith.constant dense<0.000000e+00> : vector<8x256xf32>
    %281 = tpu.matmul %277, %124, %cst_49 {dimension_numbers = #tpu.dot_dimension_numbers<[1], [0], [0], [1], [0, 0, 1, 1], [], []>} : vector<8x64xf32>, vector<64x256xf32>, vector<8x256xf32> -> vector<8x256xf32>
    %282 = arith.addf %123, %281 : vector<8x256xf32>
    %283 = vector.extract_strided_slice %282 {offsets = [0, 0], sizes = [8, 192], strides = [1, 1]} : vector<8x256xf32> to vector<8x192xf32>
    %284 = arith.negf %283 : vector<8x192xf32>
    %285 = math.exp %284 : vector<8x192xf32>
    %cst_50 = arith.constant 1.000000e+00 : f32
    %286 = vector.broadcast %cst_50 : f32 to vector<8x192xf32>
    %287 = arith.addf %286, %285 : vector<8x192xf32>
    %288 = arith.divf %286, %287 : vector<8x192xf32>
    %289 = vector.extract_strided_slice %282 {offsets = [0, 192], sizes = [8, 64], strides = [1, 1]} : vector<8x256xf32> to vector<8x64xf32>
    %290 = math.tanh %289 : vector<8x64xf32>
    %291 = vector.extract_strided_slice %288 {offsets = [0, 0], sizes = [8, 64], strides = [1, 1]} : vector<8x192xf32> to vector<8x64xf32>
    %292 = vector.extract_strided_slice %288 {offsets = [0, 64], sizes = [8, 64], strides = [1, 1]} : vector<8x192xf32> to vector<8x64xf32>
    %293 = vector.extract_strided_slice %288 {offsets = [0, 128], sizes = [8, 64], strides = [1, 1]} : vector<8x192xf32> to vector<8x64xf32>
    %294 = arith.mulf %292, %278 : vector<8x64xf32>
    %295 = arith.mulf %291, %290 : vector<8x64xf32>
    %296 = arith.addf %294, %295 : vector<8x64xf32>
    %297 = math.tanh %296 : vector<8x64xf32>
    %298 = arith.mulf %293, %297 : vector<8x64xf32>
    %cst_51 = arith.constant 0.000000e+00 : f32
    %299 = vector.broadcast %cst_51 : f32 to vector<8x64xf32>
    %300 = arith.select %70, %298, %299 : vector<8x64xi1>, vector<8x64xf32>
    %301 = vector.shape_cast %22 : vector<1x64xi1> to vector<1x64xi1>
    %302 = vector.broadcast %301 : vector<1x64xi1> to vector<8x64xi1>
    %303 = arith.select %302, %148, %300 : vector<8x64xi1>, vector<8x64xf32>
    %304 = vector.shape_cast %22 : vector<1x64xi1> to vector<1x64xi1>
    %305 = vector.broadcast %304 : vector<1x64xi1> to vector<8x64xi1>
    %306 = arith.select %305, %170, %280 : vector<8x64xi1>, vector<8x64xf32>
    %307 = vector.shape_cast %22 : vector<1x64xi1> to vector<1x64xi1>
    %308 = vector.broadcast %307 : vector<1x64xi1> to vector<8x64xi1>
    %309 = arith.select %308, %192, %258 : vector<8x64xi1>, vector<8x64xf32>
    %310 = vector.shape_cast %22 : vector<1x64xi1> to vector<1x64xi1>
    %311 = vector.broadcast %310 : vector<1x64xi1> to vector<8x64xi1>
    %312 = arith.select %311, %214, %236 : vector<8x64xi1>, vector<8x64xf32>
    %313 = vector.shape_cast %22 : vector<1x64xi1> to vector<1x64xi1>
    %314 = vector.broadcast %313 : vector<1x64xi1> to vector<8x64xi1>
    %315 = arith.select %314, %236, %214 : vector<8x64xi1>, vector<8x64xf32>
    %316 = vector.shape_cast %22 : vector<1x64xi1> to vector<1x64xi1>
    %317 = vector.broadcast %316 : vector<1x64xi1> to vector<8x64xi1>
    %318 = arith.select %317, %258, %192 : vector<8x64xi1>, vector<8x64xf32>
    %319 = vector.shape_cast %22 : vector<1x64xi1> to vector<1x64xi1>
    %320 = vector.broadcast %319 : vector<1x64xi1> to vector<8x64xi1>
    %321 = arith.select %320, %280, %170 : vector<8x64xi1>, vector<8x64xf32>
    %322 = vector.shape_cast %22 : vector<1x64xi1> to vector<1x64xi1>
    %323 = vector.broadcast %322 : vector<1x64xi1> to vector<8x64xi1>
    %324 = arith.select %323, %300, %148 : vector<8x64xi1>, vector<8x64xf32>
    %325 = tpu.concatenate %303, %306, %309, %312, %315, %318, %321, %324 in 0 : vector<8x64xf32>, vector<8x64xf32>, vector<8x64xf32>, vector<8x64xf32>, vector<8x64xf32>, vector<8x64xf32>, vector<8x64xf32>, vector<8x64xf32> -> vector<64x64xf32>
    %c0_52 = arith.constant 0 : index
    %c0_53 = arith.constant 0 : index
    %326 = vector.load %arg6[%c0_52, %c0_53] : memref<64x256xf32, #tpu.memory_space<vmem>>, vector<64x256xf32>
    %cst_54 = arith.constant dense<0.000000e+00> : vector<64x256xf32>
    %327 = tpu.matmul %325, %326, %cst_54 {dimension_numbers = #tpu.dot_dimension_numbers<[1], [0], [0], [1], [0, 0, 1, 1], [], []>} : vector<64x64xf32>, vector<64x256xf32>, vector<64x256xf32> -> vector<64x256xf32>
    %c0_55 = arith.constant 0 : index
    %c0_56 = arith.constant 0 : index
    %328 = vector.load %arg8[%c0_55, %c0_56] : memref<1x256xf32, #tpu.memory_space<vmem>>, vector<1x256xf32>
    %329 = vector.broadcast %328 : vector<1x256xf32> to vector<64x256xf32>
    %330 = arith.addf %327, %329 : vector<64x256xf32>
    %331 = vector.extract_strided_slice %330 {offsets = [0, 0], sizes = [8, 256], strides = [1, 1]} : vector<64x256xf32> to vector<8x256xf32>
    %332 = vector.extract_strided_slice %330 {offsets = [56, 0], sizes = [8, 256], strides = [1, 1]} : vector<64x256xf32> to vector<8x256xf32>
    %333 = vector.shape_cast %19 : vector<1x256xi1> to vector<1x256xi1>
    %334 = vector.broadcast %333 : vector<1x256xi1> to vector<8x256xi1>
    %335 = arith.select %334, %331, %332 : vector<8x256xi1>, vector<8x256xf32>
    %336 = vector.extract_strided_slice %330 {offsets = [8, 0], sizes = [8, 256], strides = [1, 1]} : vector<64x256xf32> to vector<8x256xf32>
    %337 = vector.extract_strided_slice %330 {offsets = [48, 0], sizes = [8, 256], strides = [1, 1]} : vector<64x256xf32> to vector<8x256xf32>
    %338 = vector.shape_cast %19 : vector<1x256xi1> to vector<1x256xi1>
    %339 = vector.broadcast %338 : vector<1x256xi1> to vector<8x256xi1>
    %340 = arith.select %339, %336, %337 : vector<8x256xi1>, vector<8x256xf32>
    %341 = vector.extract_strided_slice %330 {offsets = [16, 0], sizes = [8, 256], strides = [1, 1]} : vector<64x256xf32> to vector<8x256xf32>
    %342 = vector.extract_strided_slice %330 {offsets = [40, 0], sizes = [8, 256], strides = [1, 1]} : vector<64x256xf32> to vector<8x256xf32>
    %343 = vector.shape_cast %19 : vector<1x256xi1> to vector<1x256xi1>
    %344 = vector.broadcast %343 : vector<1x256xi1> to vector<8x256xi1>
    %345 = arith.select %344, %341, %342 : vector<8x256xi1>, vector<8x256xf32>
    %346 = vector.extract_strided_slice %330 {offsets = [24, 0], sizes = [8, 256], strides = [1, 1]} : vector<64x256xf32> to vector<8x256xf32>
    %347 = vector.extract_strided_slice %330 {offsets = [32, 0], sizes = [8, 256], strides = [1, 1]} : vector<64x256xf32> to vector<8x256xf32>
    %348 = vector.shape_cast %19 : vector<1x256xi1> to vector<1x256xi1>
    %349 = vector.broadcast %348 : vector<1x256xi1> to vector<8x256xi1>
    %350 = arith.select %349, %346, %347 : vector<8x256xi1>, vector<8x256xf32>
    %351 = vector.extract_strided_slice %330 {offsets = [32, 0], sizes = [8, 256], strides = [1, 1]} : vector<64x256xf32> to vector<8x256xf32>
    %352 = vector.extract_strided_slice %330 {offsets = [24, 0], sizes = [8, 256], strides = [1, 1]} : vector<64x256xf32> to vector<8x256xf32>
    %353 = vector.shape_cast %19 : vector<1x256xi1> to vector<1x256xi1>
    %354 = vector.broadcast %353 : vector<1x256xi1> to vector<8x256xi1>
    %355 = arith.select %354, %351, %352 : vector<8x256xi1>, vector<8x256xf32>
    %356 = vector.extract_strided_slice %330 {offsets = [40, 0], sizes = [8, 256], strides = [1, 1]} : vector<64x256xf32> to vector<8x256xf32>
    %357 = vector.extract_strided_slice %330 {offsets = [16, 0], sizes = [8, 256], strides = [1, 1]} : vector<64x256xf32> to vector<8x256xf32>
    %358 = vector.shape_cast %19 : vector<1x256xi1> to vector<1x256xi1>
    %359 = vector.broadcast %358 : vector<1x256xi1> to vector<8x256xi1>
    %360 = arith.select %359, %356, %357 : vector<8x256xi1>, vector<8x256xf32>
    %361 = vector.extract_strided_slice %330 {offsets = [48, 0], sizes = [8, 256], strides = [1, 1]} : vector<64x256xf32> to vector<8x256xf32>
    %362 = vector.extract_strided_slice %330 {offsets = [8, 0], sizes = [8, 256], strides = [1, 1]} : vector<64x256xf32> to vector<8x256xf32>
    %363 = vector.shape_cast %19 : vector<1x256xi1> to vector<1x256xi1>
    %364 = vector.broadcast %363 : vector<1x256xi1> to vector<8x256xi1>
    %365 = arith.select %364, %361, %362 : vector<8x256xi1>, vector<8x256xf32>
    %366 = vector.extract_strided_slice %330 {offsets = [56, 0], sizes = [8, 256], strides = [1, 1]} : vector<64x256xf32> to vector<8x256xf32>
    %367 = vector.extract_strided_slice %330 {offsets = [0, 0], sizes = [8, 256], strides = [1, 1]} : vector<64x256xf32> to vector<8x256xf32>
    %368 = vector.shape_cast %19 : vector<1x256xi1> to vector<1x256xi1>
    %369 = vector.broadcast %368 : vector<1x256xi1> to vector<8x256xi1>
    %370 = arith.select %369, %366, %367 : vector<8x256xi1>, vector<8x256xf32>
    %c0_57 = arith.constant 0 : index
    %c0_58 = arith.constant 0 : index
    %371 = vector.load %arg7[%c0_57, %c0_58] : memref<64x256xf32, #tpu.memory_space<vmem>>, vector<64x256xf32>
    %cst_59 = arith.constant 0.000000e+00 : f32
    %372 = vector.broadcast %cst_59 : f32 to vector<8x64xf32>
    %cst_60 = arith.constant 0.000000e+00 : f32
    %373 = vector.broadcast %cst_60 : f32 to vector<8x64xf32>
    %cst_61 = arith.constant dense<0.000000e+00> : vector<8x256xf32>
    %374 = tpu.matmul %372, %371, %cst_61 {dimension_numbers = #tpu.dot_dimension_numbers<[1], [0], [0], [1], [0, 0, 1, 1], [], []>} : vector<8x64xf32>, vector<64x256xf32>, vector<8x256xf32> -> vector<8x256xf32>
    %375 = arith.addf %335, %374 : vector<8x256xf32>
    %376 = vector.extract_strided_slice %375 {offsets = [0, 0], sizes = [8, 192], strides = [1, 1]} : vector<8x256xf32> to vector<8x192xf32>
    %377 = arith.negf %376 : vector<8x192xf32>
    %378 = math.exp %377 : vector<8x192xf32>
    %cst_62 = arith.constant 1.000000e+00 : f32
    %379 = vector.broadcast %cst_62 : f32 to vector<8x192xf32>
    %380 = arith.addf %379, %378 : vector<8x192xf32>
    %381 = arith.divf %379, %380 : vector<8x192xf32>
    %382 = vector.extract_strided_slice %375 {offsets = [0, 192], sizes = [8, 64], strides = [1, 1]} : vector<8x256xf32> to vector<8x64xf32>
    %383 = math.tanh %382 : vector<8x64xf32>
    %384 = vector.extract_strided_slice %381 {offsets = [0, 0], sizes = [8, 64], strides = [1, 1]} : vector<8x192xf32> to vector<8x64xf32>
    %385 = vector.extract_strided_slice %381 {offsets = [0, 64], sizes = [8, 64], strides = [1, 1]} : vector<8x192xf32> to vector<8x64xf32>
    %386 = vector.extract_strided_slice %381 {offsets = [0, 128], sizes = [8, 64], strides = [1, 1]} : vector<8x192xf32> to vector<8x64xf32>
    %387 = arith.mulf %385, %373 : vector<8x64xf32>
    %388 = arith.mulf %384, %383 : vector<8x64xf32>
    %389 = arith.addf %387, %388 : vector<8x64xf32>
    %390 = math.tanh %389 : vector<8x64xf32>
    %391 = arith.mulf %386, %390 : vector<8x64xf32>
    %392 = arith.select %28, %391, %372 : vector<8x64xi1>, vector<8x64xf32>
    %393 = arith.select %28, %389, %373 : vector<8x64xi1>, vector<8x64xf32>
    %cst_63 = arith.constant dense<0.000000e+00> : vector<8x256xf32>
    %394 = tpu.matmul %392, %371, %cst_63 {dimension_numbers = #tpu.dot_dimension_numbers<[1], [0], [0], [1], [0, 0, 1, 1], [], []>} : vector<8x64xf32>, vector<64x256xf32>, vector<8x256xf32> -> vector<8x256xf32>
    %395 = arith.addf %340, %394 : vector<8x256xf32>
    %396 = vector.extract_strided_slice %395 {offsets = [0, 0], sizes = [8, 192], strides = [1, 1]} : vector<8x256xf32> to vector<8x192xf32>
    %397 = arith.negf %396 : vector<8x192xf32>
    %398 = math.exp %397 : vector<8x192xf32>
    %cst_64 = arith.constant 1.000000e+00 : f32
    %399 = vector.broadcast %cst_64 : f32 to vector<8x192xf32>
    %400 = arith.addf %399, %398 : vector<8x192xf32>
    %401 = arith.divf %399, %400 : vector<8x192xf32>
    %402 = vector.extract_strided_slice %395 {offsets = [0, 192], sizes = [8, 64], strides = [1, 1]} : vector<8x256xf32> to vector<8x64xf32>
    %403 = math.tanh %402 : vector<8x64xf32>
    %404 = vector.extract_strided_slice %401 {offsets = [0, 0], sizes = [8, 64], strides = [1, 1]} : vector<8x192xf32> to vector<8x64xf32>
    %405 = vector.extract_strided_slice %401 {offsets = [0, 64], sizes = [8, 64], strides = [1, 1]} : vector<8x192xf32> to vector<8x64xf32>
    %406 = vector.extract_strided_slice %401 {offsets = [0, 128], sizes = [8, 64], strides = [1, 1]} : vector<8x192xf32> to vector<8x64xf32>
    %407 = arith.mulf %405, %393 : vector<8x64xf32>
    %408 = arith.mulf %404, %403 : vector<8x64xf32>
    %409 = arith.addf %407, %408 : vector<8x64xf32>
    %410 = math.tanh %409 : vector<8x64xf32>
    %411 = arith.mulf %406, %410 : vector<8x64xf32>
    %412 = arith.select %34, %411, %392 : vector<8x64xi1>, vector<8x64xf32>
    %413 = arith.select %34, %409, %393 : vector<8x64xi1>, vector<8x64xf32>
    %cst_65 = arith.constant dense<0.000000e+00> : vector<8x256xf32>
    %414 = tpu.matmul %412, %371, %cst_65 {dimension_numbers = #tpu.dot_dimension_numbers<[1], [0], [0], [1], [0, 0, 1, 1], [], []>} : vector<8x64xf32>, vector<64x256xf32>, vector<8x256xf32> -> vector<8x256xf32>
    %415 = arith.addf %345, %414 : vector<8x256xf32>
    %416 = vector.extract_strided_slice %415 {offsets = [0, 0], sizes = [8, 192], strides = [1, 1]} : vector<8x256xf32> to vector<8x192xf32>
    %417 = arith.negf %416 : vector<8x192xf32>
    %418 = math.exp %417 : vector<8x192xf32>
    %cst_66 = arith.constant 1.000000e+00 : f32
    %419 = vector.broadcast %cst_66 : f32 to vector<8x192xf32>
    %420 = arith.addf %419, %418 : vector<8x192xf32>
    %421 = arith.divf %419, %420 : vector<8x192xf32>
    %422 = vector.extract_strided_slice %415 {offsets = [0, 192], sizes = [8, 64], strides = [1, 1]} : vector<8x256xf32> to vector<8x64xf32>
    %423 = math.tanh %422 : vector<8x64xf32>
    %424 = vector.extract_strided_slice %421 {offsets = [0, 0], sizes = [8, 64], strides = [1, 1]} : vector<8x192xf32> to vector<8x64xf32>
    %425 = vector.extract_strided_slice %421 {offsets = [0, 64], sizes = [8, 64], strides = [1, 1]} : vector<8x192xf32> to vector<8x64xf32>
    %426 = vector.extract_strided_slice %421 {offsets = [0, 128], sizes = [8, 64], strides = [1, 1]} : vector<8x192xf32> to vector<8x64xf32>
    %427 = arith.mulf %425, %413 : vector<8x64xf32>
    %428 = arith.mulf %424, %423 : vector<8x64xf32>
    %429 = arith.addf %427, %428 : vector<8x64xf32>
    %430 = math.tanh %429 : vector<8x64xf32>
    %431 = arith.mulf %426, %430 : vector<8x64xf32>
    %432 = arith.select %40, %431, %412 : vector<8x64xi1>, vector<8x64xf32>
    %433 = arith.select %40, %429, %413 : vector<8x64xi1>, vector<8x64xf32>
    %cst_67 = arith.constant dense<0.000000e+00> : vector<8x256xf32>
    %434 = tpu.matmul %432, %371, %cst_67 {dimension_numbers = #tpu.dot_dimension_numbers<[1], [0], [0], [1], [0, 0, 1, 1], [], []>} : vector<8x64xf32>, vector<64x256xf32>, vector<8x256xf32> -> vector<8x256xf32>
    %435 = arith.addf %350, %434 : vector<8x256xf32>
    %436 = vector.extract_strided_slice %435 {offsets = [0, 0], sizes = [8, 192], strides = [1, 1]} : vector<8x256xf32> to vector<8x192xf32>
    %437 = arith.negf %436 : vector<8x192xf32>
    %438 = math.exp %437 : vector<8x192xf32>
    %cst_68 = arith.constant 1.000000e+00 : f32
    %439 = vector.broadcast %cst_68 : f32 to vector<8x192xf32>
    %440 = arith.addf %439, %438 : vector<8x192xf32>
    %441 = arith.divf %439, %440 : vector<8x192xf32>
    %442 = vector.extract_strided_slice %435 {offsets = [0, 192], sizes = [8, 64], strides = [1, 1]} : vector<8x256xf32> to vector<8x64xf32>
    %443 = math.tanh %442 : vector<8x64xf32>
    %444 = vector.extract_strided_slice %441 {offsets = [0, 0], sizes = [8, 64], strides = [1, 1]} : vector<8x192xf32> to vector<8x64xf32>
    %445 = vector.extract_strided_slice %441 {offsets = [0, 64], sizes = [8, 64], strides = [1, 1]} : vector<8x192xf32> to vector<8x64xf32>
    %446 = vector.extract_strided_slice %441 {offsets = [0, 128], sizes = [8, 64], strides = [1, 1]} : vector<8x192xf32> to vector<8x64xf32>
    %447 = arith.mulf %445, %433 : vector<8x64xf32>
    %448 = arith.mulf %444, %443 : vector<8x64xf32>
    %449 = arith.addf %447, %448 : vector<8x64xf32>
    %450 = math.tanh %449 : vector<8x64xf32>
    %451 = arith.mulf %446, %450 : vector<8x64xf32>
    %452 = arith.select %46, %451, %432 : vector<8x64xi1>, vector<8x64xf32>
    %453 = arith.select %46, %449, %433 : vector<8x64xi1>, vector<8x64xf32>
    %cst_69 = arith.constant dense<0.000000e+00> : vector<8x256xf32>
    %454 = tpu.matmul %452, %371, %cst_69 {dimension_numbers = #tpu.dot_dimension_numbers<[1], [0], [0], [1], [0, 0, 1, 1], [], []>} : vector<8x64xf32>, vector<64x256xf32>, vector<8x256xf32> -> vector<8x256xf32>
    %455 = arith.addf %355, %454 : vector<8x256xf32>
    %456 = vector.extract_strided_slice %455 {offsets = [0, 0], sizes = [8, 192], strides = [1, 1]} : vector<8x256xf32> to vector<8x192xf32>
    %457 = arith.negf %456 : vector<8x192xf32>
    %458 = math.exp %457 : vector<8x192xf32>
    %cst_70 = arith.constant 1.000000e+00 : f32
    %459 = vector.broadcast %cst_70 : f32 to vector<8x192xf32>
    %460 = arith.addf %459, %458 : vector<8x192xf32>
    %461 = arith.divf %459, %460 : vector<8x192xf32>
    %462 = vector.extract_strided_slice %455 {offsets = [0, 192], sizes = [8, 64], strides = [1, 1]} : vector<8x256xf32> to vector<8x64xf32>
    %463 = math.tanh %462 : vector<8x64xf32>
    %464 = vector.extract_strided_slice %461 {offsets = [0, 0], sizes = [8, 64], strides = [1, 1]} : vector<8x192xf32> to vector<8x64xf32>
    %465 = vector.extract_strided_slice %461 {offsets = [0, 64], sizes = [8, 64], strides = [1, 1]} : vector<8x192xf32> to vector<8x64xf32>
    %466 = vector.extract_strided_slice %461 {offsets = [0, 128], sizes = [8, 64], strides = [1, 1]} : vector<8x192xf32> to vector<8x64xf32>
    %467 = arith.mulf %465, %453 : vector<8x64xf32>
    %468 = arith.mulf %464, %463 : vector<8x64xf32>
    %469 = arith.addf %467, %468 : vector<8x64xf32>
    %470 = math.tanh %469 : vector<8x64xf32>
    %471 = arith.mulf %466, %470 : vector<8x64xf32>
    %472 = arith.select %52, %471, %452 : vector<8x64xi1>, vector<8x64xf32>
    %473 = arith.select %52, %469, %453 : vector<8x64xi1>, vector<8x64xf32>
    %cst_71 = arith.constant dense<0.000000e+00> : vector<8x256xf32>
    %474 = tpu.matmul %472, %371, %cst_71 {dimension_numbers = #tpu.dot_dimension_numbers<[1], [0], [0], [1], [0, 0, 1, 1], [], []>} : vector<8x64xf32>, vector<64x256xf32>, vector<8x256xf32> -> vector<8x256xf32>
    %475 = arith.addf %360, %474 : vector<8x256xf32>
    %476 = vector.extract_strided_slice %475 {offsets = [0, 0], sizes = [8, 192], strides = [1, 1]} : vector<8x256xf32> to vector<8x192xf32>
    %477 = arith.negf %476 : vector<8x192xf32>
    %478 = math.exp %477 : vector<8x192xf32>
    %cst_72 = arith.constant 1.000000e+00 : f32
    %479 = vector.broadcast %cst_72 : f32 to vector<8x192xf32>
    %480 = arith.addf %479, %478 : vector<8x192xf32>
    %481 = arith.divf %479, %480 : vector<8x192xf32>
    %482 = vector.extract_strided_slice %475 {offsets = [0, 192], sizes = [8, 64], strides = [1, 1]} : vector<8x256xf32> to vector<8x64xf32>
    %483 = math.tanh %482 : vector<8x64xf32>
    %484 = vector.extract_strided_slice %481 {offsets = [0, 0], sizes = [8, 64], strides = [1, 1]} : vector<8x192xf32> to vector<8x64xf32>
    %485 = vector.extract_strided_slice %481 {offsets = [0, 64], sizes = [8, 64], strides = [1, 1]} : vector<8x192xf32> to vector<8x64xf32>
    %486 = vector.extract_strided_slice %481 {offsets = [0, 128], sizes = [8, 64], strides = [1, 1]} : vector<8x192xf32> to vector<8x64xf32>
    %487 = arith.mulf %485, %473 : vector<8x64xf32>
    %488 = arith.mulf %484, %483 : vector<8x64xf32>
    %489 = arith.addf %487, %488 : vector<8x64xf32>
    %490 = math.tanh %489 : vector<8x64xf32>
    %491 = arith.mulf %486, %490 : vector<8x64xf32>
    %492 = arith.select %58, %491, %472 : vector<8x64xi1>, vector<8x64xf32>
    %493 = arith.select %58, %489, %473 : vector<8x64xi1>, vector<8x64xf32>
    %cst_73 = arith.constant dense<0.000000e+00> : vector<8x256xf32>
    %494 = tpu.matmul %492, %371, %cst_73 {dimension_numbers = #tpu.dot_dimension_numbers<[1], [0], [0], [1], [0, 0, 1, 1], [], []>} : vector<8x64xf32>, vector<64x256xf32>, vector<8x256xf32> -> vector<8x256xf32>
    %495 = arith.addf %365, %494 : vector<8x256xf32>
    %496 = vector.extract_strided_slice %495 {offsets = [0, 0], sizes = [8, 192], strides = [1, 1]} : vector<8x256xf32> to vector<8x192xf32>
    %497 = arith.negf %496 : vector<8x192xf32>
    %498 = math.exp %497 : vector<8x192xf32>
    %cst_74 = arith.constant 1.000000e+00 : f32
    %499 = vector.broadcast %cst_74 : f32 to vector<8x192xf32>
    %500 = arith.addf %499, %498 : vector<8x192xf32>
    %501 = arith.divf %499, %500 : vector<8x192xf32>
    %502 = vector.extract_strided_slice %495 {offsets = [0, 192], sizes = [8, 64], strides = [1, 1]} : vector<8x256xf32> to vector<8x64xf32>
    %503 = math.tanh %502 : vector<8x64xf32>
    %504 = vector.extract_strided_slice %501 {offsets = [0, 0], sizes = [8, 64], strides = [1, 1]} : vector<8x192xf32> to vector<8x64xf32>
    %505 = vector.extract_strided_slice %501 {offsets = [0, 64], sizes = [8, 64], strides = [1, 1]} : vector<8x192xf32> to vector<8x64xf32>
    %506 = vector.extract_strided_slice %501 {offsets = [0, 128], sizes = [8, 64], strides = [1, 1]} : vector<8x192xf32> to vector<8x64xf32>
    %507 = arith.mulf %505, %493 : vector<8x64xf32>
    %508 = arith.mulf %504, %503 : vector<8x64xf32>
    %509 = arith.addf %507, %508 : vector<8x64xf32>
    %510 = math.tanh %509 : vector<8x64xf32>
    %511 = arith.mulf %506, %510 : vector<8x64xf32>
    %512 = arith.select %64, %511, %492 : vector<8x64xi1>, vector<8x64xf32>
    %513 = arith.select %64, %509, %493 : vector<8x64xi1>, vector<8x64xf32>
    %cst_75 = arith.constant dense<0.000000e+00> : vector<8x256xf32>
    %514 = tpu.matmul %512, %371, %cst_75 {dimension_numbers = #tpu.dot_dimension_numbers<[1], [0], [0], [1], [0, 0, 1, 1], [], []>} : vector<8x64xf32>, vector<64x256xf32>, vector<8x256xf32> -> vector<8x256xf32>
    %515 = arith.addf %370, %514 : vector<8x256xf32>
    %516 = vector.extract_strided_slice %515 {offsets = [0, 0], sizes = [8, 192], strides = [1, 1]} : vector<8x256xf32> to vector<8x192xf32>
    %517 = arith.negf %516 : vector<8x192xf32>
    %518 = math.exp %517 : vector<8x192xf32>
    %cst_76 = arith.constant 1.000000e+00 : f32
    %519 = vector.broadcast %cst_76 : f32 to vector<8x192xf32>
    %520 = arith.addf %519, %518 : vector<8x192xf32>
    %521 = arith.divf %519, %520 : vector<8x192xf32>
    %522 = vector.extract_strided_slice %515 {offsets = [0, 192], sizes = [8, 64], strides = [1, 1]} : vector<8x256xf32> to vector<8x64xf32>
    %523 = math.tanh %522 : vector<8x64xf32>
    %524 = vector.extract_strided_slice %521 {offsets = [0, 0], sizes = [8, 64], strides = [1, 1]} : vector<8x192xf32> to vector<8x64xf32>
    %525 = vector.extract_strided_slice %521 {offsets = [0, 64], sizes = [8, 64], strides = [1, 1]} : vector<8x192xf32> to vector<8x64xf32>
    %526 = vector.extract_strided_slice %521 {offsets = [0, 128], sizes = [8, 64], strides = [1, 1]} : vector<8x192xf32> to vector<8x64xf32>
    %527 = arith.mulf %525, %513 : vector<8x64xf32>
    %528 = arith.mulf %524, %523 : vector<8x64xf32>
    %529 = arith.addf %527, %528 : vector<8x64xf32>
    %530 = math.tanh %529 : vector<8x64xf32>
    %531 = arith.mulf %526, %530 : vector<8x64xf32>
    %532 = arith.select %70, %531, %512 : vector<8x64xi1>, vector<8x64xf32>
    %c0_77 = arith.constant 0 : index
    %c0_78 = arith.constant 0 : index
    %533 = vector.load %arg9[%c0_77, %c0_78] : memref<64x4xf32, #tpu.memory_space<vmem>>, vector<64x4xf32>
    %cst_79 = arith.constant dense<0.000000e+00> : vector<8x4xf32>
    %534 = tpu.matmul %532, %533, %cst_79 {dimension_numbers = #tpu.dot_dimension_numbers<[1], [0], [0], [1], [0, 0, 1, 1], [], []>} : vector<8x64xf32>, vector<64x4xf32>, vector<8x4xf32> -> vector<8x4xf32>
    %c0_80 = arith.constant 0 : index
    %c0_81 = arith.constant 0 : index
    %535 = vector.load %arg10[%c0_80, %c0_81] : memref<1x4xf32, #tpu.memory_space<vmem>>, vector<1x4xf32>
    %536 = vector.broadcast %535 : vector<1x4xf32> to vector<8x4xf32>
    %537 = arith.addf %534, %536 : vector<8x4xf32>
    %c0_82 = arith.constant 0 : index
    %c0_83 = arith.constant 0 : index
    %538 = vector.load %arg11[%c0_82, %c0_83] : memref<8x4xf32, #tpu.memory_space<vmem>>, vector<8x4xf32>
    tpu.vector_store %arg11[%c0_82, %c0_83], %537 {strides = array<i32>} : memref<8x4xf32, #tpu.memory_space<vmem>>, vector<8x4xf32>,
    return
  }
}

</mosaic_0001>

<bundles_post_ra>
// kernel: lstm_forward.1
= control target key start
LH: loop header
LB: loop body
LE: loop exit
PB: predicated region body
PF: predicated region fallthrough
CT: control target
= control target key end

     0   :  { %16 = vsyncpa [#allocation3], 0  ;;  %s4554_s0 = inlined_call_operand.vmem [shape: s32[8,1], index: 0, kind: input, shape index: {}]   ;;  %s4555_s1 = inlined_call_operand.vmem [shape: s32[64,1], index: 1, kind: input, shape index: {}]   ;;  %s4556_s2 = inlined_call_operand.vmem [shape: f32[56,32], index: 2, kind: input, shape index: {}]   ;;  %s4557_s3 = inlined_call_operand.hbm [shape: f32[32,256], index: 3, kind: input, shape index: {}]   ;;  %s4558_s4 = inlined_call_operand.vmem [shape: f32[64,256], index: 4, kind: input, shape index: {}]   ;;  %s4559_s5 = inlined_call_operand.vmem [shape: f32[1,256], index: 5, kind: input, shape index: {}]   ;;  %s4560_s6 = inlined_call_operand.vmem [shape: f32[64,256], index: 6, kind: input, shape index: {}]   ;;  %s4561_s7 = inlined_call_operand.hbm [shape: f32[64,256], index: 7, kind: input, shape index: {}]   ;;  %s4562_s8 = inlined_call_operand.hbm [shape: f32[1,256], index: 8, kind: input, shape index: {}]   ;;  %s4563_s9 = inlined_call_operand.vmem [shape: f32[64,4], index: 9, kind: input, shape index: {}]   ;;  %s4564_s10 = inlined_call_operand.vmem [shape: f32[1,4], index: 10, kind: input, shape index: {}]   ;;  %s4565_s11 = inlined_call_operand.vmem [shape: f32[8,4], index: 11, kind: output, shape index: {}]  }
   0x1   :  { %17 = vsyncpa [#allocation5], 0  ;;  %s3393_s17 = smov [#allocation4]   ;;  %s3394_s19 = smov [#allocation2]  }
   0x2   :  { %s47_s18 = sshll.u32 %s3393_s17, 4  ;;  %s29_s20 = sshll.u32 %s3394_s19, 4  ;;  %s48_s18 = int_to_ptr.vmem [resolvable:$true] %s47_s18  ;;  %s3470_s20 = int_to_ptr.vmem [resolvable:$true] %s29_s20 }
   0x3   :  { %s3323_s23 = scalar_lea.hbm %s4561_s7, 2048 }
   0x4   :  { %p3324_p0 = scmp.ne.s32.totalorder %s4561_s7, %s3323_s23  ;;  %p3327_p1 = scmp.lt.u32.totalorder %s3323_s23, %s4561_s7 }
   0x6   :  { %p3329_p2 = pnand %p3327_p1, %p3324_p0 }
   0x8   :  { %3332 = shalt.err (!%p3329_p2)
}
   0x9   :  { %s3333_s28 = scalar_lea.vmem %s48_s18, 2048  ;;  %p3338_p4 = scmp.lt.s32.totalorder %s48_s18, %s48_s18 }
   0xa   :  { %p3334_p3 = scmp.ne.s32.totalorder %s48_s18, %s3333_s28  ;;  %p3339_p5 = scmp.lt.s32.totalorder %s3333_s28, %s3333_s28 }
   0xc   :  { %p3340_p6 = por %p3339_p5, %p3338_p4 }
   0xe   :  { %p3341_p7 = pnand %p3340_p6, %p3334_p3 }
  0x10   :  { %3344 = shalt.err (!%p3341_p7)
}
  0x11   :  { %s3395_s29 = smov 256   ;;  %s3396_s30 = smov 16  }
  0x12   :  { %53 = dma.hbm_to_vmem [thread:$0]  %s4561_s7, 2048, %s48_s18, [#allocation5], %s3395_s29, %s3395_s29, %s3396_s30  }
  0x13   :  { %s3345_s16 = scalar_lea.hbm %s4557_s3, 1024 }
  0x14   :  { %p3346_p8 = scmp.ne.s32.totalorder %s4557_s3, %s3345_s16  ;;  %p3349_p9 = scmp.lt.u32.totalorder %s3345_s16, %s4557_s3 }
  0x16   :  { %p3351_p10 = pnand %p3349_p9, %p3346_p8 }
  0x18   :  { %3354 = shalt.err (!%p3351_p10)
}
  0x19   :  { %s3355_s23 = scalar_lea.vmem %s3470_s20, 1024  ;;  %p3360_p12 = scmp.lt.s32.totalorder %s3470_s20, %s3470_s20 }
  0x1a   :  { %p3356_p11 = scmp.ne.s32.totalorder %s3470_s20, %s3355_s23  ;;  %p3361_p13 = scmp.lt.s32.totalorder %s3355_s23, %s3355_s23 }
  0x1c   :  { %p3362_p0 = por %p3361_p13, %p3360_p12 }
  0x1e   :  { %p3363_p1 = pnand %p3362_p0, %p3356_p11 }
  0x20   :  { %3366 = shalt.err (!%p3363_p1)
}
  0x21   :  { %35 = dma.hbm_to_vmem [thread:$0]  %s4557_s3, 1024, %s3470_s20, [#allocation3], %s3395_s29, %s3395_s29, %s3396_s30  }
  0x22   :  { %s3397_s24 = smov [#allocation6]   ;;  %s3367_s28 = scalar_lea.hbm %s4562_s8, 32 }
  0x23   :  { %s60_s25 = sshll.u32 %s3397_s24, 4  ;;  %p3368_p2 = scmp.ne.s32.totalorder %s4562_s8, %s3367_s28  ;;  %s61_s25 = int_to_ptr.vmem [resolvable:$true] %s60_s25 }
  0x24   :  { %p3371_p3 = scmp.lt.u32.totalorder %s3367_s28, %s4562_s8 }
  0x26   :  { %p3373_p4 = pnand %p3371_p3, %p3368_p2 }
  0x28   :  { %3376 = shalt.err (!%p3373_p4)
}
  0x29   :  { %s3377_s16 = scalar_lea.vmem %s61_s25, 32  ;;  %p3382_p6 = scmp.lt.s32.totalorder %s61_s25, %s61_s25 }
  0x2a   :  { %p3378_p5 = scmp.ne.s32.totalorder %s61_s25, %s3377_s16  ;;  %p3383_p7 = scmp.lt.s32.totalorder %s3377_s16, %s3377_s16 }
  0x2c   :  { %p3384_p8 = por %p3383_p7, %p3382_p6 }
  0x2e   :  { %p3385_p9 = pnand %p3384_p8, %p3378_p5 }
  0x30   :  { %3388 = shalt.err (!%p3385_p9)
}
  0x31   :  { %63 = dma.hbm_to_vmem [thread:$0]  %s4562_s8, 32, %s61_s25, [#allocation5]  }
  0x32   :  { %3389 = dma.done.wait [#allocation3], 1024  }
  0x33   :  { %3390 = vsyncadd [#allocation3], 4294966272 }
  0x34   :  { %3391 = dma.done.wait [#allocation5], 2080  }
  0x35   :  { %3392 = vsyncadd [#allocation5], 4294965216  ;;  %v3398_v0 = vmov 0   ;;  %v3399_v1 = vmov 0.0   ;;  %v129_v2 = vld [vmem:[%s4555_s1 + $0x10] sm:$0xff]  ;;  %v127_v3 = vld [vmem:[%s4555_s1] sm:$0xff]  ;;  %v78_v32 = vlaneseq }
  0x36   :  { %3130 = vset.pattern.permute.xlu1 %v3398_v0  ;;  %3129 = vset.pattern.permute.xlu0 %v3398_v0  ;;  %v130_v4 = vld [vmem:[%s4555_s1 + $0x18] sm:$0xff]  ;;  %v128_v5 = vld [vmem:[%s4555_s1 + $0x8] sm:$0xff]  ;;  %v183_v6 = vld [vmem:[%s4556_s2] sm:$0xff]  ;;  %vm190_vm0 = vcmask 457728   ;;  %vm340_vm9 = vcmask 261120   ;;  %vm514_vm14 = vcmask 523264  }
  0x37   :  { %429 = vmatprep.mubr.f32.mxu1 %v3399_v1  ;;  %142 = vperm.xlu1 %3130, %v129_v2   ;;  %v184_v7 = vld [vmem:[%s4556_s2 + $0x8] sm:$0xff]  ;;  %v185_v8 = vld [vmem:[%s4556_s2 + $0x10] sm:$0xff]  ;;  %v186_v9 = vld [vmem:[%s4556_s2 + $0x18] sm:$0xff]  ;;  %v3562_v33 = vand.u32 127, %v78_v32 }
  0x38   :  { %136 = vperm.xlu0 %3129, %v127_v3   ;;  %v2808_v10 = vpack.c.bf16 %v184_v7, %v183_v6  ;;  %v2812_v11 = vpack.c.bf16 %v186_v9, %v185_v8  ;;  %v187_v12 = vld [vmem:[%s4556_s2 + $0x20] sm:$0xff]  ;;  %v188_v13 = vld [vmem:[%s4556_s2 + $0x28] sm:$0xff]  ;;  %v134_v17 = vld [vmem:[%s4555_s1 + $0x38] sm:$0xff] }
  0x39   :  { %v132_v14 = vld [vmem:[%s4555_s1 + $0x28] sm:$0xff]  ;;  %v131_v15 = vld [vmem:[%s4555_s1 + $0x20] sm:$0xff]  ;;  %v2816_v16 = vpack.c.bf16 %v188_v13, %v187_v12  ;;  %v133_v18 = vld [vmem:[%s4555_s1 + $0x30] sm:$0xff]  ;;  %vm107_vm12 = vcmp.lt.s32.totalorder %v3562_v33, 32 }
  0x3a   :  { %2809 = vmatprep.subr.bf16.mxu0 %v2808_v10  ;;  %v189_v19 = vld [vmem:[%s4556_s2 + $0x30] sm:$0xff]  ;;  %v321_v20 = vld [vmem:[#allocation2 + $0x8] sm:$0xff]  ;;  %v323_v21 = vld [vmem:[#allocation2 + $0x18] sm:$0xff] }
  0x3b   :  { %145 = vperm.xlu1 %3130, %v130_v4   ;;  %2811 = vmatpush3.bf16.msra.mxu0 %v2808_v10  ;;  %v320_v22 = vld [vmem:[#allocation2] sm:$0xff]  ;;  %v2820_v23 = vpack.c.bf16 %v323_v21, %v321_v20  ;;  %v322_v24 = vld [vmem:[#allocation2 + $0x10] sm:$0xff]  ;;  %v325_v25 = vld [vmem:[#allocation2 + $0x28] sm:$0xff] }
  0x3c   :  { %139 = vperm.xlu0 %3129, %v128_v5   ;;  %2813 = vmatprep.subr.bf16.mxu0 %v2812_v11  ;;  %v327_v26 = vld [vmem:[#allocation2 + $0x38] sm:$0xff]  ;;  %v2822_v27 = vpack.c.bf16 %v322_v24, %v320_v22  ;;  %v324_v29 = vld [vmem:[#allocation2 + $0x20] sm:$0xff]  ;;  %v326_v30 = vld [vmem:[#allocation2 + $0x30] sm:$0xff]  ;;  %v3698_v22 = vshrl.u32 %v78_v32, 7 }
  0x3d   :  { %v2824_v28 = vpack.c.bf16 %v327_v26, %v325_v25  ;;  %2821 = vmatprep.subr.bf16.mxu1 %v2820_v23  ;;  %v2826_v31 = vpack.c.bf16 %v326_v30, %v324_v29  ;;  %v499_v50 = vld [vmem:[%s4558_s4 + $0x8] sm:$0xff]  ;;  %v501_v51 = vld [vmem:[%s4558_s4 + $0x18] sm:$0xff]  ;;  %v498_v53 = vld [vmem:[%s4558_s4] sm:$0xff] }
  0x3e   :  { %2823 = vmatpush1.bf16.msra.mxu1 %v2822_v27  ;;  %v3595_v52 = vpack.c.bf16 %v501_v51, %v499_v50  ;;  %v500_v54 = vld [vmem:[%s4558_s4 + $0x10] sm:$0xff]  ;;  %v503_v56 = vld [vmem:[%s4558_s4 + $0x28] sm:$0xff]  ;;  %v505_v57 = vld [vmem:[%s4558_s4 + $0x38] sm:$0xff]  ;;  %v332_v23 = vsub.s32 0, %v3698_v22  ;;  %v336_v26 = vsub.s32 1, %v3698_v22 }
  0x3f   :  { %151 = vperm.xlu1 %3130, %v132_v14   ;;  %2815 = vmatpush3.bf16.msra.mxu0 %v2812_v11  ;;  %v3603_v55 = vpack.c.bf16 %v500_v54, %v498_v53  ;;  %v3614_v58 = vpack.c.bf16 %v505_v57, %v503_v56  ;;  %v502_v59 = vld [vmem:[%s4558_s4 + $0x20] sm:$0xff]  ;;  %v504_v60 = vld [vmem:[%s4558_s4 + $0x30] sm:$0xff]  ;;  %v507_v62 = vld [vmem:[%s4558_s4 + $0x48] sm:$0xff] }
  0x40   :  { %148 = vperm.xlu0 %3129, %v131_v15   ;;  %2817 = vmatprep.subr.bf16.mxu0 %v2816_v16  ;;  %v3622_v61 = vpack.c.bf16 %v504_v60, %v502_v59  ;;  %v509_v63 = vld [vmem:[%s4558_s4 + $0x58] sm:$0xff]  ;;  %v506_v3 = vld [vmem:[%s4558_s4 + $0x40] sm:$0xff]  ;;  %v508_v4 = vld [vmem:[%s4558_s4 + $0x50] sm:$0xff] }
  0x41   :  { %2825 = vmatprep.subr.bf16.mxu1 %v2824_v28  ;;  %v3632_v2 = vpack.c.bf16 %v509_v63, %v507_v62  ;;  %v3640_v5 = vpack.c.bf16 %v508_v4, %v506_v3  ;;  %v511_v6 = vld [vmem:[%s4558_s4 + $0x68] sm:$0xff]  ;;  %v513_v7 = vld [vmem:[%s4558_s4 + $0x78] sm:$0xff]  ;;  %v510_v9 = vld [vmem:[%s4558_s4 + $0x60] sm:$0xff] }
  0x42   :  { %2827 = vmatpush1.bf16.msra.mxu1 %v2826_v31  ;;  %v3650_v8 = vpack.c.bf16 %v513_v7, %v511_v6  ;;  %v512_v10 = vld [vmem:[%s4558_s4 + $0x70] sm:$0xff]  ;;  %v328_v24 = vld [vmem:[%s4559_s5] sm:$0x3]  ;;  %s3400_s5 = smov 64  }
  0x43   :  { %157 = vperm.xlu1 %3130, %v134_v17   ;;  %2819 = vmatpush3.bf16.msra.mxu0 %v2816_v16  ;;  %v3658_v11 = vpack.c.bf16 %v512_v10, %v510_v9  ;;  %v333_v28 = vrot.slane %v328_v24, %v332_v23  ;;  %v337_v29 = vrot.slane %v328_v24, %v336_v26  ;;  %v2563_v50 = vld [vmem:[%s4563_s9] sm:$0xff] }
  0x44   :  { %154 = vperm.xlu0 %3129, %v133_v18   ;;  %2775 = vmatprep.subr.mxu0 %v189_v19 }
  0x45   :  { %2845 = vmatprep.subr.bf16.mxu1 %v3595_v52 }
  0x47   :  { %2776 = vmatpush3.msra.mxu0 %v189_v19 }
  0x48   :  { %2829 = vmatprep.subr.bf16.mxu0 %v3595_v52 }
  0xb6   :  { %v143_v34 = vpop.permute.xlu1 %142 }
  0xb7   :  { %v137_v35 = vpop.permute.xlu0 %136  ;;  %vm161_vm2 = vcmp.eq.s32.totalorder %v143_v34, %v3562_v33 }
  0xb8   :  { %vm159_vm1 = vcmp.eq.s32.totalorder %v137_v35, %v3562_v33  ;;  %v2661_v39 = vsel %vm161_vm2, 1.0, %v3399_v1 }
  0xb9   :  { %v2659_v36 = vsel %vm159_vm1, 1.0, %v3399_v1 }
  0xba   :  { %2777 = vmatprep.mubr.msk.f32.mxu0 %vm190_vm0, %v2659_v36  ;;  %v146_v37 = vpop.permute.xlu1 %145 }
  0xbb   :  { %v140_v38 = vpop.permute.xlu0 %139  ;;  %vm162_vm3 = vcmp.eq.s32.totalorder %v146_v37, %v3562_v33 }
  0xbc   :  { %vm160_vm4 = vcmp.eq.s32.totalorder %v140_v38, %v3562_v33  ;;  %v2662_v41 = vsel %vm162_vm3, 1.0, %v3399_v1  ;;  %v80_v38 = vadd.s32 128, %v3562_v33 }
  0xbd   :  { %v2660_v40 = vsel %vm160_vm4, 1.0, %v3399_v1 }
  0xbe   :  { %2778 = vmatmul.mubr.msk.f32.vlgmr.msra.gmra.mrb[0].mxu0 %vm190_vm0, %v2660_v40  ;;  %v152_v42 = vpop.permute.xlu1 %151 }
  0xbf   :  { %v149_v43 = vpop.permute.xlu0 %148  ;;  %2780 = vmatprep.mubr.msk.f32.mxu0 %vm190_vm0, %v2661_v39  ;;  %vm164_vm6 = vcmp.eq.s32.totalorder %v152_v42, %v3562_v33  ;;  %2831 = vmatpush1.bf16.msra.mxu0 %v3603_v55 }
  0xc0   :  { %vm163_vm5 = vcmp.eq.s32.totalorder %v149_v43, %v3562_v33  ;;  %v2664_v47 = vsel %vm164_vm6, 1.0, %v3399_v1  ;;  %2833 = vmatprep.subr.bf16.mxu0 %v3614_v58  ;;  %vm3409_vm6 = vmmov 0  }
  0xc1   :  { %v2663_v44 = vsel %vm163_vm5, 1.0, %v3399_v1 }
  0xc2   :  { %2781 = vmatmul.mubr.msk.f32.gmra.mrb[2].mxu0 %vm190_vm0, %v2662_v41  ;;  %v158_v45 = vpop.permute.xlu1 %157  ;;  %v85_v41 = vand.u32 63, %v3562_v33 }
  0xc3   :  { %2783 = vmatprep.mubr.msk.f32.mxu0 %vm190_vm0, %v2663_v44  ;;  %v155_v46 = vpop.permute.xlu0 %154  ;;  %vm166_vm8 = vcmp.eq.s32.totalorder %v158_v45, %v3562_v33  ;;  %2835 = vmatpush1.bf16.msra.mxu0 %v3622_v61  ;;  %v92_v44 = vand.u32 63, %v80_v38 }
  0xc4   :  { %vm165_vm7 = vcmp.eq.s32.totalorder %v155_v46, %v3562_v33  ;;  %v2666_v49 = vsel %vm166_vm8, 1.0, %v3399_v1  ;;  %2837 = vmatprep.subr.bf16.mxu0 %v3632_v2  ;;  %vm3723_vm10 = vcmp.lt.s32.totalorder %v85_v41, 32 }
  0xc5   :  { %v2665_v48 = vsel %vm165_vm7, 1.0, %v3399_v1  ;;  %vm3729_vm11 = vcmp.lt.s32.totalorder %v92_v44, 32  ;;  %vm2651_vm7 = vcmask 31744  }
  0xc6   :  { %2784 = vmatmul.mubr.msk.f32.gmra.mrb[4].mxu0 %vm190_vm0, %v2664_v47 }
  0xc7   :  { %2786 = vmatprep.mubr.msk.f32.mxu0 %vm190_vm0, %v2665_v48  ;;  %2839 = vmatpush1.bf16.msra.mxu0 %v3640_v5 }
  0xc8   :  { %2841 = vmatprep.subr.bf16.mxu0 %v3650_v8 }
  0xca   :  { %2787 = vmatmul.mubr.msk.f32.gmra.mrb[6].mxu0 %vm190_vm0, %v2666_v49 }
  0xcb   :  { %582 = vmatprep.mubr.f32.mxu0 %v3399_v1  ;;  %2843 = vmatpush1.bf16.msra.mxu0 %v3658_v11 }
  0xcc   :  { %2861 = vmatprep.subr.bf16.mxu0 %v3595_v52 }
  0xce   :  { %583 = vmatmul.mubr.f32.vlgmr.msra.gmra.mrb[8].mxu0 %v3399_v1 }
  0xcf   :  { %2863 = vmatpush1.bf16.msra.mxu0 %v3603_v55  ;;  %811 = vmatprep.mubr.f32.mxu0 %v3399_v1 }
  0xd0   :  { %2865 = vmatprep.subr.bf16.mxu0 %v3614_v58 }
  0xd3   :  { %2867 = vmatpush1.bf16.msra.mxu0 %v3622_v61 }
  0xd4   :  { %2869 = vmatprep.subr.bf16.mxu0 %v3632_v2 }
  0xd7   :  { %2871 = vmatpush1.bf16.msra.mxu0 %v3640_v5 }
  0xd8   :  { %2873 = vmatprep.subr.bf16.mxu0 %v3650_v8 }
  0xdb   :  { %2875 = vmatpush1.bf16.msra.mxu0 %v3658_v11 }
  0xdc   :  { %2893 = vmatprep.subr.bf16.mxu0 %v3595_v52 }
 0x191   :  { %v2779_v12 = vpop.f32.mrb[0].mxu0 }
 0x192   :  { %v281_v13 = vpop.f32.mrb[1].mxu0 }
 0x193   :  { %2675 = vmatmul.mubr.msk.f32.vlgmr.msra.gmra.mrb[0].mxu1 %vm340_vm9, %v281_v13 }
 0x194   :  { %435 = vmatprep.mubr.f32.mxu1 %v3399_v1  ;;  %2847 = vmatpush1.bf16.msra.mxu1 %v3603_v55 }
 0x195   :  { %v2782_v14 = vpop.f32.mrb[2].mxu0  ;;  %2849 = vmatprep.subr.bf16.mxu1 %v3614_v58 }
 0x196   :  { %v291_v15 = vpop.f32.mrb[3].mxu0 }
 0x197   :  { %2676 = vmatmul.mubr.msk.f32.gmra.mrb[2].mxu1 %vm340_vm9, %v2779_v12 }
 0x198   :  { %441 = vmatprep.mubr.f32.mxu1 %v3399_v1  ;;  %2851 = vmatpush1.bf16.msra.mxu1 %v3622_v61 }
 0x199   :  { %v2785_v16 = vpop.f32.mrb[4].mxu0  ;;  %2853 = vmatprep.subr.bf16.mxu1 %v3632_v2 }
 0x19a   :  { %v301_v17 = vpop.f32.mrb[5].mxu0 }
 0x19b   :  { %2677 = vmatmul.mubr.msk.f32.gmra.mrb[4].mxu1 %vm340_vm9, %v291_v15 }
 0x19c   :  { %447 = vmatprep.mubr.f32.mxu1 %v3399_v1  ;;  %2855 = vmatpush1.bf16.msra.mxu1 %v3640_v5 }
 0x19d   :  { %v2788_v18 = vpop.f32.mrb[6].mxu0  ;;  %2857 = vmatprep.subr.bf16.mxu1 %v3650_v8 }
 0x19e   :  { %v311_v19 = vpop.f32.mrb[7].mxu0 }
 0x19f   :  { %2678 = vmatmul.mubr.msk.f32.gmra.mrb[6].mxu1 %vm340_vm9, %v2782_v14 }
 0x1a0   :  { %453 = vmatprep.mubr.f32.mxu1 %v3399_v1  ;;  %2859 = vmatpush1.bf16.msra.mxu1 %v3658_v11 }
 0x1a1   :  { %2877 = vmatprep.subr.bf16.mxu1 %v3595_v52  ;;  %v584_v20 = vpop.f32.mrb[8].mxu0 }
 0x1a2   :  { %v586_v21 = vpop.f32.mrb[9].mxu0 }
 0x1a3   :  { %2679 = vmatmul.mubr.msk.f32.gmra.mrb[8].mxu1 %vm340_vm9, %v301_v17 }
 0x1a4   :  { %459 = vmatprep.mubr.f32.mxu1 %v3399_v1 }
 0x1a7   :  { %2680 = vmatmul.mubr.msk.f32.gmra.mrb[10].mxu1 %vm340_vm9, %v2785_v16 }
 0x1a8   :  { %465 = vmatprep.mubr.f32.mxu1 %v3399_v1 }
 0x1ab   :  { %2681 = vmatmul.mubr.msk.f32.gmra.mrb[12].mxu1 %vm340_vm9, %v311_v19 }
 0x1ac   :  { %471 = vmatprep.mubr.f32.mxu1 %v3399_v1 }
 0x1af   :  { %2682 = vmatmul.mubr.msk.f32.gmra.mrb[14].mxu1 %vm340_vm9, %v2788_v18 }
 0x1b0   :  { %694 = vmatprep.mubr.f32.mxu1 %v3399_v1 }
 0x266   :  { %v431_v25 = vpop.f32.mrb[0].mxu1 }
 0x267   :  { %v433_v27 = vpop.f32.mrb[1].mxu1  ;;  %v3791_v19 = vadd.f32 %v431_v25, %v333_v28 }
 0x26a   :  { %v437_v30 = vpop.f32.mrb[2].mxu1 }
 0x26b   :  { %v3709_v31 = vadd.f32 %v437_v30, %v333_v28  ;;  %v439_v32 = vpop.f32.mrb[3].mxu1 }
 0x26c   :  { %v3711_v34 = vadd.f32 %v439_v32, %v337_v29  ;;  %v3795_v32 = vadd.f32 %v433_v27, %v337_v29 }
 0x26e   :  { %v443_v35 = vpop.f32.mrb[4].mxu1 }
 0x26f   :  { %v3713_v36 = vadd.f32 %v443_v35, %v333_v28  ;;  %v445_v37 = vpop.f32.mrb[5].mxu1 }
 0x270   :  { %v3716_v39 = vadd.f32 %v445_v37, %v337_v29 }
 0x272   :  { %v449_v40 = vpop.f32.mrb[6].mxu1 }
 0x273   :  { %v3719_v42 = vadd.f32 %v449_v40, %v333_v28  ;;  %v451_v43 = vpop.f32.mrb[7].mxu1 }
 0x274   :  { %v3721_v45 = vadd.f32 %v451_v43, %v337_v29 }
 0x276   :  { %v455_v46 = vpop.f32.mrb[8].mxu1 }
 0x277   :  { %v3727_v48 = vadd.f32 %v455_v46, %v333_v28  ;;  %v457_v49 = vpop.f32.mrb[9].mxu1 }
 0x278   :  { %v3733_v51 = vadd.f32 %v457_v49, %v337_v29 }
 0x279   :  { %v488_v53 = vsel %vm3723_vm10, %v3719_v42, %v3727_v48  ;;  %v490_v54 = vsel %vm3723_vm10, %v3727_v48, %v3719_v42 }
 0x27a   :  { %v461_v56 = vpop.f32.mrb[10].mxu1  ;;  %v489_v57 = vsel %vm3729_vm11, %v3721_v45, %v3733_v51  ;;  %v491_v59 = vsel %vm3729_vm11, %v3733_v51, %v3721_v45 }
 0x27b   :  { %v3751_v60 = vadd.f32 %v461_v56, %v333_v28  ;;  %v463_v62 = vpop.f32.mrb[11].mxu1 }
 0x27c   :  { %v3753_v63 = vadd.f32 %v463_v62, %v337_v29 }
 0x27d   :  { %v486_v3 = vsel %vm3723_vm10, %v3713_v36, %v3751_v60  ;;  %v492_v4 = vsel %vm3723_vm10, %v3751_v60, %v3713_v36 }
 0x27e   :  { %v467_v6 = vpop.f32.mrb[12].mxu1  ;;  %v487_v7 = vsel %vm3729_vm11, %v3716_v39, %v3753_v63  ;;  %v493_v9 = vsel %vm3729_vm11, %v3753_v63, %v3716_v39 }
 0x27f   :  { %v3771_v10 = vadd.f32 %v467_v6, %v333_v28  ;;  %v469_v12 = vpop.f32.mrb[13].mxu1 }
 0x280   :  { %v3773_v13 = vadd.f32 %v469_v12, %v337_v29 }
 0x281   :  { %v484_v14 = vsel %vm3723_vm10, %v3709_v31, %v3771_v10  ;;  %v494_v15 = vsel %vm3723_vm10, %v3771_v10, %v3709_v31 }
 0x282   :  { %v473_v16 = vpop.f32.mrb[14].mxu1  ;;  %v485_v17 = vsel %vm3729_vm11, %v3711_v34, %v3773_v13  ;;  %v495_v18 = vsel %vm3729_vm11, %v3773_v13, %v3711_v34 }
 0x283   :  { %v3793_v24 = vadd.f32 %v473_v16, %v333_v28  ;;  %v475_v30 = vpop.f32.mrb[15].mxu1 }
 0x284   :  { %v3797_v35 = vadd.f32 %v475_v30, %v337_v29 }
 0x285   :  { %v482_v37 = vsel %vm3723_vm10, %v3791_v19, %v3793_v24  ;;  %v496_v38 = vsel %vm3723_vm10, %v3793_v24, %v3791_v19 }
 0x286   :  { %v589_v40 = vadd.f32 %v584_v20, %v482_v37  ;;  %v483_v25 = vsel %vm3729_vm11, %v3795_v32, %v3797_v35  ;;  %v497_v27 = vsel %vm3729_vm11, %v3797_v35, %v3795_v32  ;;  %v77_v20 = vld [vmem:[%s4554_s0] sm:$0xff]  ;;  %v1451_v32 = vld [vmem:[%s4560_s6 + $0x8] sm:$0xff]  ;;  %v1453_v35 = vld [vmem:[%s4560_s6 + $0x18] sm:$0xff] }
 0x287   :  { %v590_v28 = vadd.f32 %v586_v21, %v483_v25  ;;  %v3401_v25 = vmov 7  }
 0x288   :  { %v2683_v41 = vmul.f32 -1.442695, %v589_v40 }
 0x289   :  { %3131 = vtanh.f32 %v590_v28  ;;  %v2684_v16 = vmul.f32 -1.442695, %v590_v28 }
 0x28a   :  { %3133 = vpow2.f32 %v2683_v41 }
 0x293   :  { %v3132_v29 = vpop.eup %3131 }
 0x294   :  { %606 = vrot.lane.b32.xlu0 %v3132_v29, %s3400_s5  ;;  %v3134_v43 = vpop.eup %3133  ;;  %v3827_v29 = vsel %vm107_vm12, 0, %v3401_v25 }
 0x295   :  { %v597_v44 = vadd.f32 1.0, %v3134_v43 }
 0x297   :  { %3135 = vrcp.f32 %v597_v44 }
 0x298   :  { %110 = vperm.xlu0 %3129, %v77_v20  }
 0x2a1   :  { %v3136_v46 = vpop.eup %3135 }
 0x2a2   :  { %v604_v21 = vmul.f32 0.0, %v3136_v46 }
 0x306   :  { %v607_v49 = vpop.permute.xlu0 %606 }
 0x307   :  { %v609_v56 = vmul.f32 %v3136_v46, %v607_v49 }
 0x309   :  { %611 = vrot.lane.b32.xlu1 %v609_v56, %s3400_s5 }
 0x317   :  { %v3823_v37 = vpop.permute.xlu0 %110 }
 0x318   :  { %vm112_vm13 = vcmp.gt.s32.totalorder %v3823_v37, %v3827_v29 }
 0x37b   :  { %v612_v62 = vpop.permute.xlu1 %611 }
 0x37c   :  { %v614_v6 = vadd.f32 %v612_v62, %v604_v21 }
 0x37e   :  { %3137 = vtanh.f32 %v614_v6  ;;  %623 = vrot.lane.b32.xlu0 %v614_v6, %s3400_s5 }
 0x37f   :  { %3139 = vpow2.f32 %v2684_v16 }
 0x388   :  { %v3138_v12 = vpop.eup %3137 }
 0x389   :  { %617 = vrot.lane.b32.xlu1 %v3138_v12, %s3400_s5  ;;  %v3140_v30 = vpop.eup %3139 }
 0x38a   :  { %v598_v40 = vadd.f32 1.0, %v3140_v30 }
 0x38c   :  { %3141 = vrcp.f32 %v598_v40 }
 0x396   :  { %v3142_v41 = vpop.eup %3141 }
 0x3f0   :  { %v624_v20 = vpop.permute.xlu0 %623 }
 0x3f1   :  { %v626_v28 = vsel %vm112_vm13, %v624_v20, 0.0 }
 0x3f2   :  { %717 = vrot.lane.b32.xlu0 %v626_v28, %s3400_s5 }
 0x3fb   :  { %v618_v43 = vpop.permute.xlu1 %617 }
 0x3fc   :  { %v620_v44 = vmul.f32 %v3142_v41, %v618_v43 }
 0x3fe   :  { %v3838_v46 = vsel %vm112_vm13, %v620_v44, 0.0 }
 0x3ff   :  { %2685 = vmatmul.mubr.msk.f32.vlgmr.msra.gmra.mrb[16].mxu1 %vm514_vm14, %v3838_v46 }
 0x400   :  { %2879 = vmatpush1.bf16.msra.mxu1 %v3603_v55  ;;  %928 = vmatprep.mubr.f32.mxu1 %v3399_v1 }
 0x401   :  { %2881 = vmatprep.subr.bf16.mxu1 %v3614_v58 }
 0x404   :  { %2883 = vmatpush1.bf16.msra.mxu1 %v3622_v61 }
 0x405   :  { %2885 = vmatprep.subr.bf16.mxu1 %v3632_v2 }
 0x408   :  { %2887 = vmatpush1.bf16.msra.mxu1 %v3640_v5 }
 0x409   :  { %2889 = vmatprep.subr.bf16.mxu1 %v3650_v8 }
 0x40c   :  { %2891 = vmatpush1.bf16.msra.mxu1 %v3658_v11 }
 0x40d   :  { %2909 = vmatprep.subr.bf16.mxu1 %v3595_v52 }
 0x4d2   :  { %v696_v49 = vpop.f32.mrb[16].mxu1 }
 0x4d3   :  { %v701_v56 = vadd.f32 %v696_v49, %v484_v14  ;;  %v698_v21 = vpop.f32.mrb[17].mxu1  ;;  %v718_v14 = vpop.permute.xlu0 %717 }
 0x4d4   :  { %v702_v62 = vadd.f32 %v698_v21, %v485_v17 }
 0x4d5   :  { %v2686_v12 = vmul.f32 -1.442695, %v701_v56 }
 0x4d6   :  { %3143 = vtanh.f32 %v702_v62  ;;  %v2687_v49 = vmul.f32 -1.442695, %v702_v62 }
 0x4d7   :  { %3145 = vpow2.f32 %v2686_v12 }
 0x4e0   :  { %v3144_v6 = vpop.eup %3143 }
 0x4e1   :  { %722 = vrot.lane.b32.xlu1 %v3144_v6, %s3400_s5  ;;  %v3146_v16 = vpop.eup %3145  ;;  %v3402_v6 = vmov 6  }
 0x4e2   :  { %v709_v30 = vadd.f32 1.0, %v3146_v16  ;;  %v113_v12 = vsel %vm107_vm12, 1, %v3402_v6 }
 0x4e3   :  { %vm3868_vm15 = vcmp.gt.s32.totalorder %v3823_v37, %v113_v12 }
 0x4e4   :  { %3147 = vrcp.f32 %v709_v30 }
 0x4ee   :  { %v3148_v40 = vpop.eup %3147 }
 0x4ef   :  { %v720_v41 = vmul.f32 %v3148_v40, %v718_v14 }
 0x553   :  { %v723_v25 = vpop.permute.xlu1 %722 }
 0x554   :  { %v725_v20 = vmul.f32 %v3148_v40, %v723_v25 }
 0x556   :  { %727 = vrot.lane.b32.xlu1 %v725_v20, %s3400_s5 }
 0x5c8   :  { %v728_v43 = vpop.permute.xlu1 %727 }
 0x5c9   :  { %v730_v44 = vadd.f32 %v728_v43, %v720_v41 }
 0x5cb   :  { %3149 = vtanh.f32 %v730_v44  ;;  %739 = vrot.lane.b32.xlu1 %v730_v44, %s3400_s5 }
 0x5cc   :  { %3151 = vpow2.f32 %v2687_v49 }
 0x5d5   :  { %v3150_v17 = vpop.eup %3149 }
 0x5d6   :  { %733 = vrot.lane.b32.xlu0 %v3150_v17, %s3400_s5  ;;  %v3152_v56 = vpop.eup %3151 }
 0x5d7   :  { %v710_v21 = vadd.f32 1.0, %v3152_v56 }
 0x5d9   :  { %3153 = vrcp.f32 %v710_v21 }
 0x5e3   :  { %v3154_v62 = vpop.eup %3153 }
 0x63d   :  { %v740_v16 = vpop.permute.xlu1 %739 }
 0x63e   :  { %v742_v40 = vsel %vm3868_vm15, %v740_v16, %v626_v28 }
 0x63f   :  { %834 = vrot.lane.b32.xlu1 %v742_v40, %s3400_s5 }
 0x648   :  { %v734_v25 = vpop.permute.xlu0 %733 }
 0x649   :  { %v3875_v20 = vmul.f32 %v3154_v62, %v734_v25 }
 0x64b   :  { %v737_v14 = vsel %vm3868_vm15, %v3875_v20, %v3838_v46 }
 0x64c   :  { %2688 = vmatmul.mubr.msk.f32.vlgmr.msra.gmra.mrb[10].mxu0 %vm514_vm14, %v737_v14 }
 0x64d   :  { %2895 = vmatpush1.bf16.msra.mxu0 %v3603_v55  ;;  %1045 = vmatprep.mubr.f32.mxu0 %v3399_v1 }
 0x64e   :  { %2897 = vmatprep.subr.bf16.mxu0 %v3614_v58 }
 0x651   :  { %2899 = vmatpush1.bf16.msra.mxu0 %v3622_v61 }
 0x652   :  { %2901 = vmatprep.subr.bf16.mxu0 %v3632_v2 }
 0x655   :  { %2903 = vmatpush1.bf16.msra.mxu0 %v3640_v5 }
 0x656   :  { %2905 = vmatprep.subr.bf16.mxu0 %v3650_v8 }
 0x659   :  { %2907 = vmatpush1.bf16.msra.mxu0 %v3658_v11 }
 0x65a   :  { %2925 = vmatprep.subr.bf16.mxu0 %v3595_v52 }
 0x71f   :  { %v813_v28 = vpop.f32.mrb[10].mxu0 }
 0x720   :  { %v818_v41 = vadd.f32 %v813_v28, %v486_v3  ;;  %v815_v43 = vpop.f32.mrb[11].mxu0  ;;  %v835_v3 = vpop.permute.xlu1 %834 }
 0x721   :  { %v819_v44 = vadd.f32 %v815_v43, %v487_v7 }
 0x722   :  { %v2689_v49 = vmul.f32 -1.442695, %v818_v41 }
 0x723   :  { %3155 = vtanh.f32 %v819_v44  ;;  %v2690_v41 = vmul.f32 -1.442695, %v819_v44 }
 0x724   :  { %3157 = vpow2.f32 %v2689_v49  ;;  %v3403_v49 = vmov 5  }
 0x72d   :  { %v3156_v17 = vpop.eup %3155 }
 0x72e   :  { %839 = vrot.lane.b32.xlu0 %v3156_v17, %s3400_s5  ;;  %v3158_v56 = vpop.eup %3157 }
 0x72f   :  { %v826_v21 = vadd.f32 1.0, %v3158_v56  ;;  %v115_v56 = vsel %vm107_vm12, 2, %v3403_v49 }
 0x730   :  { %vm3908_vm0 = vcmp.gt.s32.totalorder %v3823_v37, %v115_v56 }
 0x731   :  { %3159 = vrcp.f32 %v826_v21 }
 0x73b   :  { %v3160_v6 = vpop.eup %3159 }
 0x73c   :  { %v837_v62 = vmul.f32 %v3160_v6, %v835_v3 }
 0x7a0   :  { %v840_v12 = vpop.permute.xlu0 %839 }
 0x7a1   :  { %v842_v16 = vmul.f32 %v3160_v6, %v840_v12 }
 0x7a3   :  { %844 = vrot.lane.b32.xlu0 %v842_v16, %s3400_s5 }
 0x815   :  { %v845_v25 = vpop.permute.xlu0 %844 }
 0x816   :  { %v847_v28 = vadd.f32 %v845_v25, %v837_v62 }
 0x818   :  { %3161 = vtanh.f32 %v847_v28  ;;  %856 = vrot.lane.b32.xlu0 %v847_v28, %s3400_s5 }
 0x819   :  { %3163 = vpow2.f32 %v2690_v41 }
 0x822   :  { %v3162_v7 = vpop.eup %3161 }
 0x823   :  { %850 = vrot.lane.b32.xlu1 %v3162_v7, %s3400_s5  ;;  %v3164_v43 = vpop.eup %3163 }
 0x824   :  { %v827_v17 = vadd.f32 1.0, %v3164_v43 }
 0x826   :  { %3165 = vrcp.f32 %v827_v17 }
 0x830   :  { %v3166_v44 = vpop.eup %3165 }
 0x88a   :  { %v857_v21 = vpop.permute.xlu0 %856 }
 0x88b   :  { %v859_v12 = vsel %vm3908_vm0, %v857_v21, %v742_v40 }
 0x88c   :  { %951 = vrot.lane.b32.xlu0 %v859_v12, %s3400_s5 }
 0x895   :  { %v851_v16 = vpop.permute.xlu1 %850 }
 0x896   :  { %v3915_v3 = vmul.f32 %v3166_v44, %v851_v16 }
 0x898   :  { %v854_v62 = vsel %vm3908_vm0, %v3915_v3, %v737_v14 }
 0x899   :  { %2691 = vmatmul.mubr.msk.f32.vlgmr.msra.gmra.mrb[18].mxu1 %vm514_vm14, %v854_v62 }
 0x89a   :  { %2911 = vmatpush1.bf16.msra.mxu1 %v3603_v55  ;;  %1162 = vmatprep.mubr.f32.mxu1 %v3399_v1 }
 0x89b   :  { %2913 = vmatprep.subr.bf16.mxu1 %v3614_v58 }
 0x89e   :  { %2915 = vmatpush1.bf16.msra.mxu1 %v3622_v61 }
 0x89f   :  { %2917 = vmatprep.subr.bf16.mxu1 %v3632_v2 }
 0x8a2   :  { %2919 = vmatpush1.bf16.msra.mxu1 %v3640_v5 }
 0x8a3   :  { %2921 = vmatprep.subr.bf16.mxu1 %v3650_v8 }
 0x8a6   :  { %2923 = vmatpush1.bf16.msra.mxu1 %v3658_v11 }
 0x8a7   :  { %2941 = vmatprep.subr.bf16.mxu1 %v3595_v52 }
 0x96c   :  { %v930_v40 = vpop.f32.mrb[18].mxu1 }
 0x96d   :  { %v935_v14 = vadd.f32 %v930_v40, %v488_v53  ;;  %v932_v25 = vpop.f32.mrb[19].mxu1  ;;  %v952_v53 = vpop.permute.xlu0 %951 }
 0x96e   :  { %v936_v28 = vadd.f32 %v932_v25, %v489_v57 }
 0x96f   :  { %v2692_v41 = vmul.f32 -1.442695, %v935_v14 }
 0x970   :  { %3167 = vtanh.f32 %v936_v28  ;;  %v2693_v40 = vmul.f32 -1.442695, %v936_v28 }
 0x971   :  { %3169 = vpow2.f32 %v2692_v41 }
 0x97a   :  { %v3168_v7 = vpop.eup %3167 }
 0x97b   :  { %956 = vrot.lane.b32.xlu1 %v3168_v7, %s3400_s5  ;;  %v3170_v52 = vpop.eup %3169  ;;  %v3404_v7 = vmov 4  }
 0x97c   :  { %v943_v43 = vadd.f32 1.0, %v3170_v52  ;;  %v117_v41 = vsel %vm107_vm12, 3, %v3404_v7 }
 0x97d   :  { %vm3947_vm1 = vcmp.gt.s32.totalorder %v3823_v37, %v117_v41 }
 0x97e   :  { %3171 = vrcp.f32 %v943_v43 }
 0x988   :  { %v3172_v17 = vpop.eup %3171 }
 0x989   :  { %v954_v21 = vmul.f32 %v3172_v17, %v952_v53 }
 0x9ed   :  { %v957_v49 = vpop.permute.xlu1 %956 }
 0x9ee   :  { %v959_v56 = vmul.f32 %v3172_v17, %v957_v49 }
 0x9f0   :  { %961 = vrot.lane.b32.xlu1 %v959_v56, %s3400_s5 }
 0xa62   :  { %v962_v44 = vpop.permute.xlu1 %961 }
 0xa63   :  { %v964_v16 = vadd.f32 %v962_v44, %v954_v21 }
 0xa65   :  { %3173 = vtanh.f32 %v964_v16  ;;  %973 = vrot.lane.b32.xlu1 %v964_v16, %s3400_s5 }
 0xa66   :  { %3175 = vpow2.f32 %v2693_v40 }
 0xa6f   :  { %v3174_v57 = vpop.eup %3173 }
 0xa70   :  { %967 = vrot.lane.b32.xlu0 %v3174_v57, %s3400_s5  ;;  %v3176_v14 = vpop.eup %3175 }
 0xa71   :  { %v944_v25 = vadd.f32 1.0, %v3176_v14 }
 0xa73   :  { %3177 = vrcp.f32 %v944_v25 }
 0xa7d   :  { %v3178_v28 = vpop.eup %3177 }
 0xad7   :  { %v974_v52 = vpop.permute.xlu1 %973 }
 0xad8   :  { %v976_v17 = vsel %vm3947_vm1, %v974_v52, %v859_v12 }
 0xad9   :  { %1068 = vrot.lane.b32.xlu1 %v976_v17, %s3400_s5 }
 0xae2   :  { %v968_v49 = vpop.permute.xlu0 %967 }
 0xae3   :  { %v970_v56 = vmul.f32 %v3178_v28, %v968_v49  ;;  %v3405_v49 = vmov 3  }
 0xae5   :  { %v971_v53 = vsel %vm3947_vm1, %v970_v56, %v854_v62 }
 0xae6   :  { %2694 = vmatmul.mubr.msk.f32.vlgmr.msra.gmra.mrb[12].mxu0 %vm514_vm14, %v971_v53 }
 0xae7   :  { %2927 = vmatpush1.bf16.msra.mxu0 %v3603_v55  ;;  %1279 = vmatprep.mubr.f32.mxu0 %v3399_v1 }
 0xae8   :  { %2929 = vmatprep.subr.bf16.mxu0 %v3614_v58 }
 0xaeb   :  { %2931 = vmatpush1.bf16.msra.mxu0 %v3622_v61 }
 0xaec   :  { %2933 = vmatprep.subr.bf16.mxu0 %v3632_v2 }
 0xaef   :  { %2935 = vmatpush1.bf16.msra.mxu0 %v3640_v5 }
 0xaf0   :  { %2937 = vmatprep.subr.bf16.mxu0 %v3650_v8 }
 0xaf3   :  { %2939 = vmatpush1.bf16.msra.mxu0 %v3658_v11 }
 0xb4b   :  { %v1069_v48 = vpop.permute.xlu1 %1068 }
 0xbb9   :  { %v1047_v12 = vpop.f32.mrb[12].mxu0 }
 0xbba   :  { %v1052_v62 = vadd.f32 %v1047_v12, %v490_v54  ;;  %v1049_v21 = vpop.f32.mrb[13].mxu0  ;;  %v119_v12 = vsel %vm107_vm12, 4, %v3405_v49 }
 0xbbb   :  { %v1053_v44 = vadd.f32 %v1049_v21, %v491_v59  ;;  %vm3982_vm2 = vcmp.gt.s32.totalorder %v3823_v37, %v119_v12 }
 0xbbc   :  { %v2695_v57 = vmul.f32 -1.442695, %v1052_v62 }
 0xbbd   :  { %3179 = vtanh.f32 %v1053_v44  ;;  %v2696_v51 = vmul.f32 -1.442695, %v1053_v44 }
 0xbbe   :  { %3181 = vpow2.f32 %v2695_v57 }
 0xbc7   :  { %v3180_v16 = vpop.eup %3179 }
 0xbc8   :  { %1073 = vrot.lane.b32.xlu0 %v3180_v16, %s3400_s5  ;;  %v3182_v40 = vpop.eup %3181 }
 0xbc9   :  { %v1060_v14 = vadd.f32 1.0, %v3182_v40 }
 0xbcb   :  { %3183 = vrcp.f32 %v1060_v14  ;;  %v977_v14 = vsel %vm3947_vm1, %v970_v56, 0.0 }
 0xbd5   :  { %v3184_v25 = vpop.eup %3183 }
 0xbd6   :  { %v1071_v54 = vmul.f32 %v3184_v25, %v1069_v48 }
 0xc3a   :  { %v1074_v7 = vpop.permute.xlu0 %1073 }
 0xc3b   :  { %v1076_v42 = vmul.f32 %v3184_v25, %v1074_v7 }
 0xc3d   :  { %1078 = vrot.lane.b32.xlu0 %v1076_v42, %s3400_s5 }
 0xcaf   :  { %v1079_v41 = vpop.permute.xlu0 %1078 }
 0xcb0   :  { %v1081_v52 = vadd.f32 %v1079_v41, %v1071_v54 }
 0xcb2   :  { %3185 = vtanh.f32 %v1081_v52  ;;  %1090 = vrot.lane.b32.xlu0 %v1081_v52, %s3400_s5 }
 0xcb3   :  { %3187 = vpow2.f32 %v2696_v51 }
 0xcbc   :  { %v3186_v45 = vpop.eup %3185 }
 0xcbd   :  { %1084 = vrot.lane.b32.xlu1 %v3186_v45, %s3400_s5  ;;  %v3188_v59 = vpop.eup %3187  ;;  %v3406_v45 = vmov 2  }
 0xcbe   :  { %v1061_v28 = vadd.f32 1.0, %v3188_v59  ;;  %v121_v51 = vsel %vm107_vm12, 5, %v3406_v45  ;;  %v743_v45 = vsel %vm3868_vm15, %v3875_v20, 0.0 }
 0xcbf   :  { %vm4029_vm3 = vcmp.gt.s32.totalorder %v3823_v37, %v121_v51 }
 0xcc0   :  { %3189 = vrcp.f32 %v1061_v28 }
 0xcca   :  { %v3190_v44 = vpop.eup %3189 }
 0xd24   :  { %v1091_v62 = vpop.permute.xlu0 %1090 }
 0xd25   :  { %v1093_v16 = vsel %vm3982_vm2, %v1091_v62, %v976_v17 }
 0xd26   :  { %1185 = vrot.lane.b32.xlu0 %v1093_v16, %s3400_s5 }
 0xd2f   :  { %v1085_v57 = vpop.permute.xlu1 %1084 }
 0xd30   :  { %v1087_v40 = vmul.f32 %v3190_v44, %v1085_v57  ;;  %v860_v57 = vsel %vm3908_vm0, %v3915_v3, 0.0 }
 0xd32   :  { %v1088_v25 = vsel %vm3982_vm2, %v1087_v40, %v971_v53  ;;  %v1094_v7 = vsel %vm3982_vm2, %v1087_v40, 0.0 }
 0xd33   :  { %2697 = vmatmul.mubr.msk.f32.vlgmr.msra.gmra.mrb[20].mxu1 %vm514_vm14, %v1088_v25  ;;  %v3998_v42 = vsel %vm107_vm12, %v977_v14, %v1094_v7  ;;  %v4002_v17 = vsel %vm107_vm12, %v1094_v7, %v977_v14 }
 0xd34   :  { %2943 = vmatpush1.bf16.msra.mxu1 %v3603_v55  ;;  %1396 = vmatprep.mubr.f32.mxu1 %v3399_v1 }
 0xd35   :  { %2945 = vmatprep.subr.bf16.mxu1 %v3614_v58 }
 0xd38   :  { %2947 = vmatpush1.bf16.msra.mxu1 %v3622_v61 }
 0xd39   :  { %2949 = vmatprep.subr.bf16.mxu1 %v3632_v2 }
 0xd3c   :  { %2951 = vmatpush1.bf16.msra.mxu1 %v3640_v5 }
 0xd3d   :  { %2953 = vmatprep.subr.bf16.mxu1 %v3650_v8 }
 0xd40   :  { %2955 = vmatpush1.bf16.msra.mxu1 %v3658_v11 }
 0xd98   :  { %v1186_v60 = vpop.permute.xlu0 %1185 }
 0xe06   :  { %v1164_v56 = vpop.f32.mrb[20].mxu1 }
 0xe07   :  { %v1169_v55 = vadd.f32 %v1164_v56, %v492_v4  ;;  %v1166_v53 = vpop.f32.mrb[21].mxu1 }
 0xe08   :  { %v1170_v58 = vadd.f32 %v1166_v53, %v493_v9 }
 0xe09   :  { %v2698_v2 = vmul.f32 -1.442695, %v1169_v55 }
 0xe0a   :  { %3191 = vtanh.f32 %v1170_v58  ;;  %v2699_v63 = vmul.f32 -1.442695, %v1170_v58 }
 0xe0b   :  { %3193 = vpow2.f32 %v2698_v2 }
 0xe14   :  { %v3192_v61 = vpop.eup %3191 }
 0xe15   :  { %1190 = vrot.lane.b32.xlu1 %v3192_v61, %s3400_s5  ;;  %v3194_v5 = vpop.eup %3193 }
 0xe16   :  { %v1177_v8 = vadd.f32 1.0, %v3194_v5 }
 0xe18   :  { %3195 = vrcp.f32 %v1177_v8 }
 0xe22   :  { %v3196_v11 = vpop.eup %3195 }
 0xe23   :  { %v1188_v4 = vmul.f32 %v3196_v11, %v1186_v60  ;;  %v3407_v60 = vmov 1  }
 0xe87   :  { %v1191_v48 = vpop.permute.xlu1 %1190 }
 0xe88   :  { %v1193_v36 = vmul.f32 %v3196_v11, %v1191_v48 }
 0xe8a   :  { %1195 = vrot.lane.b32.xlu1 %v1193_v36, %s3400_s5 }
 0xefc   :  { %v1196_v54 = vpop.permute.xlu1 %1195 }
 0xefd   :  { %v1198_v41 = vadd.f32 %v1196_v54, %v1188_v4  ;;  %v123_v4 = vsel %vm107_vm12, 6, %v3407_v60  ;;  %v1463_v60 = vld [vmem:[%s4560_s6 + $0x68] sm:$0xff] }
 0xefe   :  { %vm4070_vm4 = vcmp.gt.s32.totalorder %v3823_v37, %v123_v4  ;;  %v1465_v4 = vld [vmem:[%s4560_s6 + $0x78] sm:$0xff] }
 0xeff   :  { %3197 = vtanh.f32 %v1198_v41  ;;  %1207 = vrot.lane.b32.xlu1 %v1198_v41, %s3400_s5 }
 0xf00   :  { %3199 = vpow2.f32 %v2699_v63 }
 0xf09   :  { %v3198_v39 = vpop.eup %3197 }
 0xf0a   :  { %1201 = vrot.lane.b32.xlu0 %v3198_v39, %s3400_s5  ;;  %v3200_v9 = vpop.eup %3199 }
 0xf0b   :  { %v1178_v52 = vadd.f32 1.0, %v3200_v9 }
 0xf0d   :  { %3201 = vrcp.f32 %v1178_v52 }
 0xf17   :  { %v3202_v12 = vpop.eup %3201 }
 0xf71   :  { %v1208_v59 = vpop.permute.xlu1 %1207 }
 0xf72   :  { %v1210_v49 = vsel %vm4029_vm3, %v1208_v59, %v1093_v16 }
 0xf73   :  { %1302 = vrot.lane.b32.xlu1 %v1210_v49, %s3400_s5 }
 0xf7c   :  { %v1202_v62 = vpop.permute.xlu0 %1201 }
 0xf7d   :  { %v1204_v44 = vmul.f32 %v3202_v12, %v1202_v62 }
 0xf7f   :  { %v1205_v40 = vsel %vm4029_vm3, %v1204_v44, %v1088_v25  ;;  %v1211_v14 = vsel %vm4029_vm3, %v1204_v44, 0.0 }
 0xf80   :  { %2700 = vmatmul.mubr.msk.f32.vlgmr.msra.gmra.mrb[14].mxu0 %vm514_vm14, %v1205_v40  ;;  %v4046_v16 = vsel %vm107_vm12, %v860_v57, %v1211_v14  ;;  %v4050_v7 = vsel %vm107_vm12, %v1211_v14, %v860_v57 }
 0xf81   :  { %1566 = vmatprep.mubr.f32.mxu0 %v3399_v1 }
 0xfe5   :  { %v1303_v10 = vpop.permute.xlu1 %1302 }
0x1053   :  { %v1281_v56 = vpop.f32.mrb[14].mxu0 }
0x1054   :  { %v1286_v3 = vadd.f32 %v1281_v56, %v494_v15  ;;  %v1283_v25 = vpop.f32.mrb[15].mxu0 }
0x1055   :  { %v1287_v55 = vadd.f32 %v1283_v25, %v495_v18  ;;  %v2956_v25 = vpack.c.bf16 %v1453_v35, %v1451_v32  ;;  %v1640_v35 = vld [vmem:[#allocation4 + $0x48] sm:$0xff] }
0x1056   :  { %v2701_v58 = vmul.f32 -1.442695, %v1286_v3 }
0x1057   :  { %3203 = vtanh.f32 %v1287_v55  ;;  %v2702_v13 = vmul.f32 -1.442695, %v1287_v55  ;;  %v1452_v55 = vld [vmem:[%s4560_s6 + $0x10] sm:$0xff]  ;;  %2957 = vmatprep.subr.bf16.mxu0 %v2956_v25 }
0x1058   :  { %3205 = vpow2.f32 %v2701_v58  ;;  %v1457_v58 = vld [vmem:[%s4560_s6 + $0x38] sm:$0xff] }
0x1061   :  { %v3204_v53 = vpop.eup %3203 }
0x1062   :  { %1307 = vrot.lane.b32.xlu0 %v3204_v53, %s3400_s5  ;;  %v3206_v61 = vpop.eup %3205  ;;  %v1455_v53 = vld [vmem:[%s4560_s6 + $0x28] sm:$0xff] }
0x1063   :  { %v1294_v2 = vadd.f32 1.0, %v3206_v61 }
0x1065   :  { %3207 = vrcp.f32 %v1294_v2  ;;  %v2960_v2 = vpack.c.bf16 %v1457_v58, %v1455_v53  ;;  %v1641_v53 = vld [vmem:[#allocation4 + $0x50] sm:$0xff] }
0x106f   :  { %v3208_v5 = vpop.eup %3207 }
0x1070   :  { %v1305_v15 = vmul.f32 %v3208_v5, %v1303_v10  ;;  %v1461_v10 = vld [vmem:[%s4560_s6 + $0x58] sm:$0xff] }
0x10d4   :  { %v1308_v8 = vpop.permute.xlu0 %1307 }
0x10d5   :  { %v1310_v31 = vmul.f32 %v3208_v5, %v1308_v8  ;;  %v1454_v5 = vld [vmem:[%s4560_s6 + $0x20] sm:$0xff]  ;;  %v1456_v8 = vld [vmem:[%s4560_s6 + $0x30] sm:$0xff] }
0x10d7   :  { %1312 = vrot.lane.b32.xlu0 %v1310_v31, %s3400_s5  ;;  %v1459_v31 = vld [vmem:[%s4560_s6 + $0x48] sm:$0xff] }
0x1149   :  { %v1313_v11 = vpop.permute.xlu0 %1312 }
0x114a   :  { %v1315_v48 = vadd.f32 %v1313_v11, %v1305_v15  ;;  %v2962_v15 = vpack.c.bf16 %v1456_v8, %v1454_v5  ;;  %v2964_v11 = vpack.c.bf16 %v1461_v10, %v1459_v31  ;;  %v1643_v8 = vld [vmem:[#allocation4 + $0x60] sm:$0xff]  ;;  %v1645_v31 = vld [vmem:[#allocation4 + $0x70] sm:$0xff] }
0x114b   :  { %v4179_v10 = vpack.c.bf16 %v1645_v31, %v1643_v8 }
0x114c   :  { %3209 = vtanh.f32 %v1315_v48  ;;  %1324 = vrot.lane.b32.xlu0 %v1315_v48, %s3400_s5  ;;  %v1458_v48 = vld [vmem:[%s4560_s6 + $0x40] sm:$0xff] }
0x114d   :  { %3211 = vpow2.f32 %v2702_v13 }
0x1156   :  { %v3210_v34 = vpop.eup %3209 }
0x1157   :  { %1318 = vrot.lane.b32.xlu1 %v3210_v34, %s3400_s5  ;;  %v3212_v18 = vpop.eup %3211  ;;  %v1460_v34 = vld [vmem:[%s4560_s6 + $0x50] sm:$0xff] }
0x1158   :  { %v1295_v36 = vadd.f32 1.0, %v3212_v18  ;;  %v2966_v13 = vpack.c.bf16 %v1460_v34, %v1458_v48  ;;  %v4198_v34 = vsel %vm107_vm12, 7, %v3398_v0 }
0x1159   :  { %vm126_vm5 = vcmp.gt.s32.totalorder %v3823_v37, %v4198_v34 }
0x115a   :  { %3213 = vrcp.f32 %v1295_v36 }
0x1164   :  { %v3214_v63 = vpop.eup %3213 }
0x11be   :  { %v1325_v54 = vpop.permute.xlu0 %1324 }
0x11bf   :  { %v1327_v39 = vsel %vm4070_vm4, %v1325_v54, %v1210_v49 }
0x11c0   :  { %1419 = vrot.lane.b32.xlu0 %v1327_v39, %s3400_s5  ;;  %v2968_v39 = vpack.c.bf16 %v1465_v4, %v1463_v60 }
0x11c9   :  { %v1319_v9 = vpop.permute.xlu1 %1318 }
0x11ca   :  { %v1321_v52 = vmul.f32 %v3214_v63, %v1319_v9  ;;  %v1462_v63 = vld [vmem:[%s4560_s6 + $0x60] sm:$0xff]  ;;  %v1464_v9 = vld [vmem:[%s4560_s6 + $0x70] sm:$0xff] }
0x11cc   :  { %v1322_v51 = vsel %vm4070_vm4, %v1321_v52, %v1205_v40  ;;  %v1328_v59 = vsel %vm4070_vm4, %v1321_v52, 0.0 }
0x11cd   :  { %2703 = vmatmul.mubr.msk.f32.vlgmr.msra.gmra.mrb[22].mxu1 %vm514_vm14, %v1322_v51  ;;  %v4087_v49 = vsel %vm107_vm12, %v743_v45, %v1328_v59  ;;  %v4091_v12 = vsel %vm107_vm12, %v1328_v59, %v743_v45  ;;  %v2970_v45 = vpack.c.bf16 %v1464_v9, %v1462_v63  ;;  %v1632_v59 = vld [vmem:[#allocation4 + $0x8] sm:$0xff] }
0x11ce   :  { %1711 = vmatprep.mubr.f32.mxu1 %v3399_v1 }
0x1232   :  { %v1420_v18 = vpop.permute.xlu0 %1419 }
0x12a0   :  { %v1398_v62 = vpop.f32.mrb[22].mxu1 }
0x12a1   :  { %v1403_v20 = vadd.f32 %v1398_v62, %v496_v38  ;;  %v1400_v44 = vpop.f32.mrb[23].mxu1  ;;  %v1634_v62 = vld [vmem:[#allocation4 + $0x18] sm:$0xff] }
0x12a2   :  { %v4104_v57 = vadd.f32 %v1400_v44, %v497_v27  ;;  %v1450_v27 = vld [vmem:[%s4560_s6] sm:$0xff] }
0x12a3   :  { %v2704_v14 = vmul.f32 -1.442695, %v1403_v20  ;;  %v2958_v61 = vpack.c.bf16 %v1452_v55, %v1450_v27  ;;  %v4158_v20 = vpack.c.bf16 %v1634_v62, %v1632_v59  ;;  %v1631_v44 = vld [vmem:[#allocation4] sm:$0xff]  ;;  %v1642_v27 = vld [vmem:[#allocation4 + $0x58] sm:$0xff] }
0x12a4   :  { %3215 = vtanh.f32 %v4104_v57  ;;  %v4171_v25 = vpack.c.bf16 %v1642_v27, %v1640_v35  ;;  %v1639_v55 = vld [vmem:[#allocation4 + $0x40] sm:$0xff] }
0x12a5   :  { %3217 = vpow2.f32 %v2704_v14  ;;  %2959 = vmatpush1.bf16.msra.mxu0 %v2958_v61  ;;  %2973 = vmatprep.subr.bf16.mxu1 %v4158_v20  ;;  %v4173_v58 = vpack.c.bf16 %v1641_v53, %v1639_v55  ;;  %v1644_v61 = vld [vmem:[#allocation4 + $0x68] sm:$0xff] }
0x12a6   :  { %2961 = vmatprep.subr.bf16.mxu0 %v2960_v2  ;;  %v1646_v2 = vld [vmem:[#allocation4 + $0x78] sm:$0xff] }
0x12a7   :  { %v4177_v5 = vpack.c.bf16 %v1646_v2, %v1644_v61 }
0x12a9   :  { %2963 = vmatpush1.bf16.msra.mxu0 %v2962_v15  ;;  %v2705_v15 = vmul.f32 -1.442695, %v4104_v57 }
0x12aa   :  { %2965 = vmatprep.subr.bf16.mxu0 %v2964_v11 }
0x12ad   :  { %2967 = vmatpush1.bf16.msra.mxu0 %v2966_v13 }
0x12ae   :  { %v3216_v40 = vpop.eup %3215  ;;  %2969 = vmatprep.subr.bf16.mxu0 %v2968_v39 }
0x12af   :  { %1424 = vrot.lane.b32.xlu1 %v3216_v40, %s3400_s5  ;;  %v3218_v56 = vpop.eup %3217  ;;  %v1633_v40 = vld [vmem:[#allocation4 + $0x10] sm:$0xff] }
0x12b0   :  { %v1411_v3 = vadd.f32 1.0, %v3218_v56  ;;  %v4160_v14 = vpack.c.bf16 %v1633_v40, %v1631_v44  ;;  %v1636_v56 = vld [vmem:[#allocation4 + $0x28] sm:$0xff] }
0x12b1   :  { %2971 = vmatpush1.bf16.msra.mxu0 %v2970_v45 }
0x12b2   :  { %3219 = vrcp.f32 %v1411_v3  ;;  %3005 = vmatprep.subr.bf16.mxu0 %v4158_v20  ;;  %2975 = vmatpush1.bf16.msra.mxu1 %v4160_v14  ;;  %v1638_v3 = vld [vmem:[#allocation4 + $0x38] sm:$0xff] }
0x12bc   :  { %v3220_v19 = vpop.eup %3219 }
0x12bd   :  { %v1422_v36 = vmul.f32 %v3220_v19, %v1420_v18 }
0x1321   :  { %v1425_v24 = vpop.permute.xlu1 %1424 }
0x1322   :  { %v1427_v38 = vmul.f32 %v3220_v19, %v1425_v24  ;;  %v4165_v19 = vpack.c.bf16 %v1638_v3, %v1636_v56  ;;  %v1635_v24 = vld [vmem:[#allocation4 + $0x20] sm:$0xff] }
0x1324   :  { %1429 = vrot.lane.b32.xlu1 %v1427_v38, %s3400_s5  ;;  %v1637_v38 = vld [vmem:[#allocation4 + $0x30] sm:$0xff]  ;;  %2977 = vmatprep.subr.bf16.mxu1 %v4165_v19 }
0x1325   :  { %v4167_v32 = vpack.c.bf16 %v1637_v38, %v1635_v24 }
0x1327   :  { %2979 = vmatpush1.bf16.msra.mxu1 %v4167_v32 }
0x1328   :  { %2981 = vmatprep.subr.bf16.mxu1 %v4171_v25 }
0x132b   :  { %2983 = vmatpush1.bf16.msra.mxu1 %v4173_v58 }
0x132c   :  { %2985 = vmatprep.subr.bf16.mxu1 %v4177_v5 }
0x132f   :  { %2987 = vmatpush1.bf16.msra.mxu1 %v4179_v10 }
0x1330   :  { %2989 = vmatprep.subr.bf16.mxu1 %v4158_v20 }
0x1332   :  { %1712 = vmatmul.mubr.f32.vlgmr.msra.gmra.mrb[24].mxu1 %v3399_v1 }
0x1333   :  { %2991 = vmatpush1.bf16.msra.mxu1 %v4160_v14  ;;  %1823 = vmatprep.mubr.f32.mxu1 %v3399_v1 }
0x1334   :  { %2993 = vmatprep.subr.bf16.mxu1 %v4165_v19 }
0x1337   :  { %2995 = vmatpush1.bf16.msra.mxu1 %v4167_v32 }
0x1338   :  { %2997 = vmatprep.subr.bf16.mxu1 %v4171_v25 }
0x133b   :  { %2999 = vmatpush1.bf16.msra.mxu1 %v4173_v58 }
0x133c   :  { %3001 = vmatprep.subr.bf16.mxu1 %v4177_v5 }
0x133f   :  { %3003 = vmatpush1.bf16.msra.mxu1 %v4179_v10 }
0x1340   :  { %3021 = vmatprep.subr.bf16.mxu1 %v4158_v20 }
0x1396   :  { %v1430_v54 = vpop.permute.xlu1 %1429 }
0x1397   :  { %v1432_v52 = vadd.f32 %v1430_v54, %v1422_v36 }
0x1399   :  { %3221 = vtanh.f32 %v1432_v52 }
0x139a   :  { %3223 = vpow2.f32 %v2705_v15 }
0x13a3   :  { %v3222_v51 = vpop.eup %3221 }
0x13a4   :  { %1435 = vrot.lane.b32.xlu0 %v3222_v51, %s3400_s5  ;;  %v3224_v11 = vpop.eup %3223 }
0x13a5   :  { %v1412_v48 = vadd.f32 1.0, %v3224_v11 }
0x13a7   :  { %3225 = vrcp.f32 %v1412_v48 }
0x13b1   :  { %v3226_v13 = vpop.eup %3225 }
0x1416   :  { %v1436_v18 = vpop.permute.xlu0 %1435 }
0x1417   :  { %v1438_v36 = vmul.f32 %v3226_v13, %v1436_v18 }
0x1419   :  { %v1439_v60 = vsel %vm126_vm5, %v1438_v36, 0.0 }
0x141a   :  { %v1442_v57 = vsel %vm107_vm12, %v3838_v46, %v1439_v60  ;;  %v1449_v0 = vsel %vm107_vm12, %v1439_v60, %v3838_v46 }
0x141b   :  { %2706 = vmatmul.mubr.msk.f32.vlgmr.msra.gmra.mrb[16].mxu0 %vm514_vm14, %v1442_v57 }
0x141c   :  { %1572 = vmatprep.mubr.f32.mxu0 %v3399_v1  ;;  %3007 = vmatpush1.bf16.msra.mxu0 %v4160_v14 }
0x141d   :  { %3009 = vmatprep.subr.bf16.mxu0 %v4165_v19 }
0x141f   :  { %2707 = vmatmul.mubr.msk.f32.gmra.mrb[18].mxu0 %vm514_vm14, %v4087_v49 }
0x1420   :  { %1578 = vmatprep.mubr.f32.mxu0 %v3399_v1  ;;  %3011 = vmatpush1.bf16.msra.mxu0 %v4167_v32 }
0x1421   :  { %3013 = vmatprep.subr.bf16.mxu0 %v4171_v25 }
0x1423   :  { %2708 = vmatmul.mubr.msk.f32.gmra.mrb[20].mxu0 %vm514_vm14, %v4046_v16  ;;  %v1466_v16 = vld [vmem:[#allocation6] sm:$0x3] }
0x1424   :  { %1584 = vmatprep.mubr.f32.mxu0 %v3399_v1  ;;  %3015 = vmatpush1.bf16.msra.mxu0 %v4173_v58  ;;  %v1471_v4 = vrot.slane %v1466_v16, %v332_v23 }
0x1425   :  { %3017 = vmatprep.subr.bf16.mxu0 %v4177_v5 }
0x1427   :  { %2709 = vmatmul.mubr.msk.f32.gmra.mrb[22].mxu0 %vm514_vm14, %v3998_v42  ;;  %v1713_v42 = vpop.f32.mrb[24].mxu1 }
0x1428   :  { %1590 = vmatprep.mubr.f32.mxu0 %v3399_v1  ;;  %3019 = vmatpush1.bf16.msra.mxu0 %v4179_v10 }
0x1429   :  { %3037 = vmatprep.subr.bf16.mxu0 %v4158_v20 }
0x142b   :  { %2710 = vmatmul.mubr.msk.f32.gmra.mrb[24].mxu0 %vm514_vm14, %v4002_v17  ;;  %v1715_v17 = vpop.f32.mrb[25].mxu1 }
0x142c   :  { %1596 = vmatprep.mubr.f32.mxu0 %v3399_v1 }
0x142f   :  { %2711 = vmatmul.mubr.msk.f32.gmra.mrb[26].mxu0 %vm514_vm14, %v4050_v7 }
0x1430   :  { %1602 = vmatprep.mubr.f32.mxu0 %v3399_v1 }
0x1433   :  { %2712 = vmatmul.mubr.msk.f32.gmra.mrb[28].mxu0 %vm514_vm14, %v4091_v12  ;;  %v1475_v12 = vrot.slane %v1466_v16, %v336_v26 }
0x1434   :  { %1608 = vmatprep.mubr.f32.mxu0 %v3399_v1 }
0x1437   :  { %2713 = vmatmul.mubr.msk.f32.gmra.mrb[30].mxu0 %vm514_vm14, %v1449_v0 }
0x1438   :  { %1939 = vmatprep.mubr.f32.mxu0 %v3399_v1 }
0x14ee   :  { %v1568_v49 = vpop.f32.mrb[16].mxu0 }
0x14ef   :  { %v1570_v7 = vpop.f32.mrb[17].mxu0  ;;  %v4317_v16 = vadd.f32 %v1568_v49, %v1471_v4 }
0x14f2   :  { %v1574_v54 = vpop.f32.mrb[18].mxu0 }
0x14f3   :  { %v4245_v39 = vadd.f32 %v1574_v54, %v1471_v4  ;;  %v1576_v33 = vpop.f32.mrb[19].mxu0 }
0x14f4   :  { %v4247_v46 = vadd.f32 %v1576_v33, %v1475_v12 }
0x14f6   :  { %v1580_v63 = vpop.f32.mrb[20].mxu0 }
0x14f7   :  { %v4249_v9 = vadd.f32 %v1580_v63, %v1471_v4  ;;  %v1582_v52 = vpop.f32.mrb[21].mxu0  ;;  %v4321_v63 = vadd.f32 %v1570_v7, %v1475_v12 }
0x14f8   :  { %v4251_v45 = vadd.f32 %v1582_v52, %v1475_v12 }
0x14fa   :  { %v1586_v51 = vpop.f32.mrb[22].mxu0 }
0x14fb   :  { %v4253_v59 = vadd.f32 %v1586_v51, %v1471_v4  ;;  %v1588_v62 = vpop.f32.mrb[23].mxu0 }
0x14fc   :  { %v4255_v23 = vadd.f32 %v1588_v62, %v1475_v12 }
0x14fe   :  { %v1592_v22 = vpop.f32.mrb[24].mxu0 }
0x14ff   :  { %v4257_v26 = vadd.f32 %v1592_v22, %v1471_v4  ;;  %v1594_v44 = vpop.f32.mrb[25].mxu0 }
0x1500   :  { %v4259_v40 = vadd.f32 %v1594_v44, %v1475_v12 }
0x1501   :  { %v1621_v56 = vsel %vm3723_vm10, %v4253_v59, %v4257_v26  ;;  %v1623_v3 = vsel %vm3723_vm10, %v4257_v26, %v4253_v59 }
0x1502   :  { %v1598_v24 = vpop.f32.mrb[26].mxu0  ;;  %v1622_v38 = vsel %vm3729_vm11, %v4255_v23, %v4259_v40  ;;  %v1624_v35 = vsel %vm3729_vm11, %v4259_v40, %v4255_v23 }
0x1503   :  { %v4277_v27 = vadd.f32 %v1598_v24, %v1471_v4  ;;  %v1600_v55 = vpop.f32.mrb[27].mxu0 }
0x1504   :  { %v4279_v53 = vadd.f32 %v1600_v55, %v1475_v12 }
0x1505   :  { %v1619_v61 = vsel %vm3723_vm10, %v4249_v9, %v4277_v27  ;;  %v1625_v2 = vsel %vm3723_vm10, %v4277_v27, %v4249_v9 }
0x1506   :  { %v1604_v8 = vpop.f32.mrb[28].mxu0  ;;  %v1620_v31 = vsel %vm3729_vm11, %v4251_v45, %v4279_v53  ;;  %v1626_v15 = vsel %vm3729_vm11, %v4279_v53, %v4251_v45 }
0x1507   :  { %v4297_v11 = vadd.f32 %v1604_v8, %v1471_v4  ;;  %v1606_v48 = vpop.f32.mrb[29].mxu0 }
0x1508   :  { %v4299_v13 = vadd.f32 %v1606_v48, %v1475_v12 }
0x1509   :  { %v1617_v18 = vsel %vm3723_vm10, %v4245_v39, %v4297_v11  ;;  %v1627_v36 = vsel %vm3723_vm10, %v4297_v11, %v4245_v39 }
0x150a   :  { %v1610_v60 = vpop.f32.mrb[30].mxu0  ;;  %v1618_v57 = vsel %vm3729_vm11, %v4247_v46, %v4299_v13  ;;  %v1628_v0 = vsel %vm3729_vm11, %v4299_v13, %v4247_v46 }
0x150b   :  { %v4319_v54 = vadd.f32 %v1610_v60, %v1471_v4  ;;  %v1612_v33 = vpop.f32.mrb[31].mxu0 }
0x150c   :  { %v4323_v52 = vadd.f32 %v1612_v33, %v1475_v12 }
0x150d   :  { %v1615_v51 = vsel %vm3723_vm10, %v4317_v16, %v4319_v54  ;;  %v1629_v62 = vsel %vm3723_vm10, %v4319_v54, %v4317_v16  ;;  %v2564_v54 = vld [vmem:[%s4563_s9 + $0x8] sm:$0xff] }
0x150e   :  { %v1718_v22 = vadd.f32 %v1713_v42, %v1615_v51  ;;  %v1616_v49 = vsel %vm3729_vm11, %v4321_v63, %v4323_v52 }
0x150f   :  { %v1719_v4 = vadd.f32 %v1715_v17, %v1616_v49 }
0x1510   :  { %v2714_v44 = vmul.f32 -1.442695, %v1718_v22 }
0x1511   :  { %3227 = vtanh.f32 %v1719_v4  ;;  %v2715_v49 = vmul.f32 -1.442695, %v1719_v4 }
0x1512   :  { %3229 = vpow2.f32 %v2714_v44 }
0x151b   :  { %v3228_v12 = vpop.eup %3227 }
0x151c   :  { %1735 = vrot.lane.b32.xlu1 %v3228_v12, %s3400_s5  ;;  %v3230_v24 = vpop.eup %3229 }
0x151d   :  { %v1726_v55 = vadd.f32 1.0, %v3230_v24 }
0x151f   :  { %3231 = vrcp.f32 %v1726_v55 }
0x1529   :  { %v3232_v42 = vpop.eup %3231 }
0x152a   :  { %v1733_v60 = vmul.f32 0.0, %v3232_v42 }
0x158e   :  { %v1736_v8 = vpop.permute.xlu1 %1735 }
0x158f   :  { %v1738_v48 = vmul.f32 %v3232_v42, %v1736_v8 }
0x1591   :  { %1740 = vrot.lane.b32.xlu0 %v1738_v48, %s3400_s5 }
0x1603   :  { %v1741_v33 = vpop.permute.xlu0 %1740 }
0x1604   :  { %v1743_v51 = vadd.f32 %v1741_v33, %v1733_v60 }
0x1606   :  { %3233 = vtanh.f32 %v1743_v51  ;;  %1752 = vrot.lane.b32.xlu0 %v1743_v51, %s3400_s5 }
0x1607   :  { %3235 = vpow2.f32 %v2715_v49 }
0x1610   :  { %v3234_v17 = vpop.eup %3233 }
0x1611   :  { %1746 = vrot.lane.b32.xlu1 %v3234_v17, %s3400_s5  ;;  %v3236_v22 = vpop.eup %3235 }
0x1612   :  { %v1727_v12 = vadd.f32 1.0, %v3236_v22 }
0x1614   :  { %3237 = vrcp.f32 %v1727_v12 }
0x161e   :  { %v3238_v55 = vpop.eup %3237 }
0x1678   :  { %v1753_v44 = vpop.permute.xlu0 %1752 }
0x1679   :  { %v1755_v24 = vsel %vm112_vm13, %v1753_v44, 0.0 }
0x167a   :  { %1846 = vrot.lane.b32.xlu0 %v1755_v24, %s3400_s5 }
0x1683   :  { %v1747_v42 = vpop.permute.xlu1 %1746 }
0x1684   :  { %v1749_v8 = vmul.f32 %v3238_v55, %v1747_v42 }
0x1686   :  { %v1750_v48 = vsel %vm112_vm13, %v1749_v8, 0.0 }
0x1687   :  { %2716 = vmatmul.mubr.msk.f32.vlgmr.msra.gmra.mrb[26].mxu1 %vm514_vm14, %v1750_v48 }
0x1688   :  { %3023 = vmatpush1.bf16.msra.mxu1 %v4160_v14  ;;  %2055 = vmatprep.mubr.f32.mxu1 %v3399_v1 }
0x1689   :  { %3025 = vmatprep.subr.bf16.mxu1 %v4165_v19 }
0x168c   :  { %3027 = vmatpush1.bf16.msra.mxu1 %v4167_v32 }
0x168d   :  { %3029 = vmatprep.subr.bf16.mxu1 %v4171_v25 }
0x1690   :  { %3031 = vmatpush1.bf16.msra.mxu1 %v4173_v58 }
0x1691   :  { %3033 = vmatprep.subr.bf16.mxu1 %v4177_v5 }
0x1694   :  { %3035 = vmatpush1.bf16.msra.mxu1 %v4179_v10 }
0x1695   :  { %3053 = vmatprep.subr.bf16.mxu1 %v4158_v20 }
0x16ec   :  { %v1847_v42 = vpop.permute.xlu0 %1846 }
0x175a   :  { %v1825_v29 = vpop.f32.mrb[26].mxu1 }
0x175b   :  { %v1830_v4 = vadd.f32 %v1825_v29, %v1617_v18  ;;  %v1827_v60 = vpop.f32.mrb[27].mxu1 }
0x175c   :  { %v1831_v33 = vadd.f32 %v1827_v60, %v1618_v57 }
0x175d   :  { %v2717_v17 = vmul.f32 -1.442695, %v1830_v4 }
0x175e   :  { %3239 = vtanh.f32 %v1831_v33  ;;  %v2718_v29 = vmul.f32 -1.442695, %v1831_v33 }
0x175f   :  { %3241 = vpow2.f32 %v2717_v17 }
0x1768   :  { %v3240_v51 = vpop.eup %3239 }
0x1769   :  { %1851 = vrot.lane.b32.xlu1 %v3240_v51, %s3400_s5  ;;  %v3242_v49 = vpop.eup %3241 }
0x176a   :  { %v1838_v22 = vadd.f32 1.0, %v3242_v49 }
0x176c   :  { %3243 = vrcp.f32 %v1838_v22 }
0x1776   :  { %v3244_v12 = vpop.eup %3243 }
0x1777   :  { %v1849_v8 = vmul.f32 %v3244_v12, %v1847_v42 }
0x17db   :  { %v1852_v44 = vpop.permute.xlu1 %1851 }
0x17dc   :  { %v1854_v55 = vmul.f32 %v3244_v12, %v1852_v44 }
0x17de   :  { %1856 = vrot.lane.b32.xlu1 %v1854_v55, %s3400_s5 }
0x1850   :  { %v1857_v7 = vpop.permute.xlu1 %1856 }
0x1851   :  { %v1859_v18 = vadd.f32 %v1857_v7, %v1849_v8 }
0x1853   :  { %3245 = vtanh.f32 %v1859_v18  ;;  %1868 = vrot.lane.b32.xlu1 %v1859_v18, %s3400_s5 }
0x1854   :  { %3247 = vpow2.f32 %v2718_v29 }
0x185d   :  { %v3246_v57 = vpop.eup %3245 }
0x185e   :  { %1862 = vrot.lane.b32.xlu0 %v3246_v57, %s3400_s5  ;;  %v3248_v4 = vpop.eup %3247 }
0x185f   :  { %v1839_v60 = vadd.f32 1.0, %v3248_v4 }
0x1861   :  { %3249 = vrcp.f32 %v1839_v60 }
0x186b   :  { %v3250_v49 = vpop.eup %3249 }
0x18c5   :  { %v1869_v51 = vpop.permute.xlu1 %1868 }
0x18c6   :  { %v1871_v17 = vsel %vm3868_vm15, %v1869_v51, %v1755_v24 }
0x18c7   :  { %1962 = vrot.lane.b32.xlu1 %v1871_v17, %s3400_s5 }
0x18d0   :  { %v1863_v22 = vpop.permute.xlu0 %1862 }
0x18d1   :  { %v1865_v7 = vmul.f32 %v3250_v49, %v1863_v22 }
0x18d3   :  { %v1866_v12 = vsel %vm3868_vm15, %v1865_v7, %v1750_v48 }
0x18d4   :  { %2719 = vmatmul.mubr.msk.f32.vlgmr.msra.gmra.mrb[32].mxu0 %vm514_vm14, %v1866_v12 }
0x18d5   :  { %3039 = vmatpush1.bf16.msra.mxu0 %v4160_v14  ;;  %2171 = vmatprep.mubr.f32.mxu0 %v3399_v1 }
0x18d6   :  { %3041 = vmatprep.subr.bf16.mxu0 %v4165_v19 }
0x18d9   :  { %3043 = vmatpush1.bf16.msra.mxu0 %v4167_v32 }
0x18da   :  { %3045 = vmatprep.subr.bf16.mxu0 %v4171_v25 }
0x18dd   :  { %3047 = vmatpush1.bf16.msra.mxu0 %v4173_v58 }
0x18de   :  { %3049 = vmatprep.subr.bf16.mxu0 %v4177_v5 }
0x18e1   :  { %3051 = vmatpush1.bf16.msra.mxu0 %v4179_v10 }
0x18e2   :  { %3069 = vmatprep.subr.bf16.mxu0 %v4158_v20 }
0x19a7   :  { %v1941_v30 = vpop.f32.mrb[32].mxu0 }
0x19a8   :  { %v1946_v24 = vadd.f32 %v1941_v30, %v1619_v61  ;;  %v1943_v48 = vpop.f32.mrb[33].mxu0  ;;  %v1963_v61 = vpop.permute.xlu1 %1962 }
0x19a9   :  { %v1947_v33 = vadd.f32 %v1943_v48, %v1620_v31 }
0x19aa   :  { %v2720_v55 = vmul.f32 -1.442695, %v1946_v24 }
0x19ab   :  { %3251 = vtanh.f32 %v1947_v33  ;;  %v2721_v49 = vmul.f32 -1.442695, %v1947_v33 }
0x19ac   :  { %3253 = vpow2.f32 %v2720_v55 }
0x19b5   :  { %v3252_v44 = vpop.eup %3251 }
0x19b6   :  { %1967 = vrot.lane.b32.xlu0 %v3252_v44, %s3400_s5  ;;  %v3254_v42 = vpop.eup %3253 }
0x19b7   :  { %v1954_v8 = vadd.f32 1.0, %v3254_v42 }
0x19b9   :  { %3255 = vrcp.f32 %v1954_v8 }
0x19c3   :  { %v3256_v18 = vpop.eup %3255 }
0x19c4   :  { %v1965_v4 = vmul.f32 %v3256_v18, %v1963_v61 }
0x1a28   :  { %v1968_v57 = vpop.permute.xlu0 %1967 }
0x1a29   :  { %v1970_v29 = vmul.f32 %v3256_v18, %v1968_v57 }
0x1a2b   :  { %1972 = vrot.lane.b32.xlu0 %v1970_v29, %s3400_s5 }
0x1a9d   :  { %v1973_v60 = vpop.permute.xlu0 %1972 }
0x1a9e   :  { %v1975_v51 = vadd.f32 %v1973_v60, %v1965_v4 }
0x1aa0   :  { %3257 = vtanh.f32 %v1975_v51  ;;  %1984 = vrot.lane.b32.xlu0 %v1975_v51, %s3400_s5 }
0x1aa1   :  { %3259 = vpow2.f32 %v2721_v49 }
0x1aaa   :  { %v3258_v31 = vpop.eup %3257 }
0x1aab   :  { %1978 = vrot.lane.b32.xlu1 %v3258_v31, %s3400_s5  ;;  %v3260_v22 = vpop.eup %3259 }
0x1aac   :  { %v1955_v7 = vadd.f32 1.0, %v3260_v22 }
0x1aae   :  { %3261 = vrcp.f32 %v1955_v7 }
0x1ab8   :  { %v3262_v48 = vpop.eup %3261 }
0x1b12   :  { %v1985_v30 = vpop.permute.xlu0 %1984 }
0x1b13   :  { %v1987_v24 = vsel %vm3908_vm0, %v1985_v30, %v1871_v17 }
0x1b14   :  { %2078 = vrot.lane.b32.xlu0 %v1987_v24, %s3400_s5 }
0x1b1d   :  { %v1979_v44 = vpop.permute.xlu1 %1978 }
0x1b1e   :  { %v1981_v55 = vmul.f32 %v3262_v48, %v1979_v44 }
0x1b20   :  { %v1982_v42 = vsel %vm3908_vm0, %v1981_v55, %v1866_v12 }
0x1b21   :  { %2722 = vmatmul.mubr.msk.f32.vlgmr.msra.gmra.mrb[28].mxu1 %vm514_vm14, %v1982_v42 }
0x1b22   :  { %3055 = vmatpush1.bf16.msra.mxu1 %v4160_v14  ;;  %2287 = vmatprep.mubr.f32.mxu1 %v3399_v1 }
0x1b23   :  { %3057 = vmatprep.subr.bf16.mxu1 %v4165_v19 }
0x1b26   :  { %3059 = vmatpush1.bf16.msra.mxu1 %v4167_v32 }
0x1b27   :  { %3061 = vmatprep.subr.bf16.mxu1 %v4171_v25 }
0x1b2a   :  { %3063 = vmatpush1.bf16.msra.mxu1 %v4173_v58 }
0x1b2b   :  { %3065 = vmatprep.subr.bf16.mxu1 %v4177_v5 }
0x1b2e   :  { %3067 = vmatpush1.bf16.msra.mxu1 %v4179_v10 }
0x1b2f   :  { %3085 = vmatprep.subr.bf16.mxu1 %v4158_v20 }
0x1bf4   :  { %v2057_v6 = vpop.f32.mrb[28].mxu1 }
0x1bf5   :  { %v2062_v17 = vadd.f32 %v2057_v6, %v1621_v56  ;;  %v2059_v12 = vpop.f32.mrb[29].mxu1  ;;  %v2079_v56 = vpop.permute.xlu0 %2078 }
0x1bf6   :  { %v2063_v33 = vadd.f32 %v2059_v12, %v1622_v38 }
0x1bf7   :  { %v2723_v18 = vmul.f32 -1.442695, %v2062_v17 }
0x1bf8   :  { %3263 = vtanh.f32 %v2063_v33  ;;  %v2724_v49 = vmul.f32 -1.442695, %v2063_v33 }
0x1bf9   :  { %3265 = vpow2.f32 %v2723_v18 }
0x1c02   :  { %v3264_v8 = vpop.eup %3263 }
0x1c03   :  { %2083 = vrot.lane.b32.xlu1 %v3264_v8, %s3400_s5  ;;  %v3266_v20 = vpop.eup %3265 }
0x1c04   :  { %v2070_v57 = vadd.f32 1.0, %v3266_v20 }
0x1c06   :  { %3267 = vrcp.f32 %v2070_v57 }
0x1c10   :  { %v3268_v29 = vpop.eup %3267 }
0x1c11   :  { %v2081_v60 = vmul.f32 %v3268_v29, %v2079_v56 }
0x1c75   :  { %v2084_v61 = vpop.permute.xlu1 %2083 }
0x1c76   :  { %v2086_v4 = vmul.f32 %v3268_v29, %v2084_v61 }
0x1c78   :  { %2088 = vrot.lane.b32.xlu1 %v2086_v4, %s3400_s5 }
0x1cea   :  { %v2089_v51 = vpop.permute.xlu1 %2088 }
0x1ceb   :  { %v2091_v31 = vadd.f32 %v2089_v51, %v2081_v60 }
0x1ced   :  { %3269 = vtanh.f32 %v2091_v31  ;;  %2100 = vrot.lane.b32.xlu1 %v2091_v31, %s3400_s5 }
0x1cee   :  { %3271 = vpow2.f32 %v2724_v49 }
0x1cf7   :  { %v3270_v38 = vpop.eup %3269 }
0x1cf8   :  { %2094 = vrot.lane.b32.xlu0 %v3270_v38, %s3400_s5  ;;  %v3272_v22 = vpop.eup %3271 }
0x1cf9   :  { %v2071_v7 = vadd.f32 1.0, %v3272_v22 }
0x1cfb   :  { %3273 = vrcp.f32 %v2071_v7 }
0x1d05   :  { %v3274_v44 = vpop.eup %3273 }
0x1d5f   :  { %v2101_v30 = vpop.permute.xlu1 %2100 }
0x1d60   :  { %v2103_v48 = vsel %vm3947_vm1, %v2101_v30, %v1987_v24 }
0x1d61   :  { %2194 = vrot.lane.b32.xlu1 %v2103_v48, %s3400_s5 }
0x1d6a   :  { %v2095_v55 = vpop.permute.xlu0 %2094 }
0x1d6b   :  { %v2097_v6 = vmul.f32 %v3274_v44, %v2095_v55 }
0x1d6d   :  { %v2098_v17 = vsel %vm3947_vm1, %v2097_v6, %v1982_v42 }
0x1d6e   :  { %2725 = vmatmul.mubr.msk.f32.vlgmr.msra.gmra.mrb[34].mxu0 %vm514_vm14, %v2098_v17 }
0x1d6f   :  { %3071 = vmatpush1.bf16.msra.mxu0 %v4160_v14  ;;  %2403 = vmatprep.mubr.f32.mxu0 %v3399_v1 }
0x1d70   :  { %3073 = vmatprep.subr.bf16.mxu0 %v4165_v19 }
0x1d73   :  { %3075 = vmatpush1.bf16.msra.mxu0 %v4167_v32 }
0x1d74   :  { %3077 = vmatprep.subr.bf16.mxu0 %v4171_v25 }
0x1d77   :  { %3079 = vmatpush1.bf16.msra.mxu0 %v4173_v58 }
0x1d78   :  { %3081 = vmatprep.subr.bf16.mxu0 %v4177_v5 }
0x1d7b   :  { %3083 = vmatpush1.bf16.msra.mxu0 %v4179_v10 }
0x1dd3   :  { %v2195_v26 = vpop.permute.xlu1 %2194 }
0x1e41   :  { %v2173_v43 = vpop.f32.mrb[34].mxu0 }
0x1e42   :  { %v2178_v24 = vadd.f32 %v2173_v43, %v1623_v3  ;;  %v2175_v42 = vpop.f32.mrb[35].mxu0 }
0x1e43   :  { %v2179_v12 = vadd.f32 %v2175_v42, %v1624_v35 }
0x1e44   :  { %v2726_v8 = vmul.f32 -1.442695, %v2178_v24 }
0x1e45   :  { %3275 = vtanh.f32 %v2179_v12  ;;  %v2727_v40 = vmul.f32 -1.442695, %v2179_v12 }
0x1e46   :  { %3277 = vpow2.f32 %v2726_v8 }
0x1e4f   :  { %v3276_v33 = vpop.eup %3275 }
0x1e50   :  { %2199 = vrot.lane.b32.xlu0 %v3276_v33, %s3400_s5  ;;  %v3278_v18 = vpop.eup %3277 }
0x1e51   :  { %v2186_v20 = vadd.f32 1.0, %v3278_v18 }
0x1e53   :  { %3279 = vrcp.f32 %v2186_v20 }
0x1e5d   :  { %v3280_v57 = vpop.eup %3279 }
0x1e5e   :  { %v2197_v3 = vmul.f32 %v3280_v57, %v2195_v26 }
0x1ec2   :  { %v2200_v29 = vpop.permute.xlu0 %2199 }
0x1ec3   :  { %v2202_v59 = vmul.f32 %v3280_v57, %v2200_v29 }
0x1ec5   :  { %2204 = vrot.lane.b32.xlu0 %v2202_v59, %s3400_s5 }
0x1f37   :  { %v2205_v61 = vpop.permute.xlu0 %2204 }
0x1f38   :  { %v2207_v4 = vadd.f32 %v2205_v61, %v2197_v3 }
0x1f3a   :  { %3281 = vtanh.f32 %v2207_v4  ;;  %2216 = vrot.lane.b32.xlu0 %v2207_v4, %s3400_s5 }
0x1f3b   :  { %3283 = vpow2.f32 %v2727_v40 }
0x1f44   :  { %v3282_v23 = vpop.eup %3281 }
0x1f45   :  { %2210 = vrot.lane.b32.xlu1 %v3282_v23, %s3400_s5  ;;  %v3284_v35 = vpop.eup %3283 }
0x1f46   :  { %v2187_v56 = vadd.f32 1.0, %v3284_v35 }
0x1f48   :  { %3285 = vrcp.f32 %v2187_v56 }
0x1f52   :  { %v3286_v31 = vpop.eup %3285 }
0x1fac   :  { %v2217_v60 = vpop.permute.xlu0 %2216 }
0x1fad   :  { %v2219_v51 = vsel %vm3982_vm2, %v2217_v60, %v2103_v48 }
0x1fae   :  { %2310 = vrot.lane.b32.xlu0 %v2219_v51, %s3400_s5 }
0x1fb7   :  { %v2211_v38 = vpop.permute.xlu1 %2210 }
0x1fb8   :  { %v2213_v49 = vmul.f32 %v3286_v31, %v2211_v38 }
0x1fba   :  { %v2214_v22 = vsel %vm3982_vm2, %v2213_v49, %v2098_v17 }
0x1fbb   :  { %2728 = vmatmul.mubr.msk.f32.vlgmr.msra.gmra.mrb[30].mxu1 %vm514_vm14, %v2214_v22 }
0x1fbc   :  { %3087 = vmatpush1.bf16.msra.mxu1 %v4160_v14  ;;  %2519 = vmatprep.mubr.f32.mxu1 %v3399_v1 }
0x1fbd   :  { %3089 = vmatprep.subr.bf16.mxu1 %v4165_v19 }
0x1fc0   :  { %3091 = vmatpush1.bf16.msra.mxu1 %v4167_v32 }
0x1fc1   :  { %3093 = vmatprep.subr.bf16.mxu1 %v4171_v25 }
0x1fc4   :  { %3095 = vmatpush1.bf16.msra.mxu1 %v4173_v58 }
0x1fc5   :  { %3097 = vmatprep.subr.bf16.mxu1 %v4177_v5 }
0x1fc8   :  { %3099 = vmatpush1.bf16.msra.mxu1 %v4179_v10 }
0x2020   :  { %v2311_v27 = vpop.permute.xlu0 %2310 }
0x208e   :  { %v2289_v21 = vpop.f32.mrb[30].mxu1 }
0x208f   :  { %v2294_v14 = vadd.f32 %v2289_v21, %v1625_v2  ;;  %v2291_v7 = vpop.f32.mrb[31].mxu1  ;;  %v4582_v21 = vsel %vm3729_vm11, %v4323_v52, %v4321_v63  ;;  %v2565_v63 = vld [vmem:[%s4563_s9 + $0x10] sm:$0xff]  ;;  %v3408_v52 = vmov 0.0|0.0  }
0x2090   :  { %v2295_v19 = vadd.f32 %v2291_v7, %v1626_v15  ;;  %3100 = vmatprep.subr.bf16.mxu0 %v3408_v52 }
0x2091   :  { %v2729_v25 = vmul.f32 -1.442695, %v2294_v14 }
0x2092   :  { %3287 = vtanh.f32 %v2295_v19  ;;  %v2730_v53 = vmul.f32 -1.442695, %v2295_v19 }
0x2093   :  { %3289 = vpow2.f32 %v2729_v25 }
0x209c   :  { %v3288_v32 = vpop.eup %3287 }
0x209d   :  { %2315 = vrot.lane.b32.xlu1 %v3288_v32, %s3400_s5  ;;  %v3290_v58 = vpop.eup %3289 }
0x209e   :  { %v2302_v5 = vadd.f32 1.0, %v3290_v58  ;;  %v2566_v58 = vld [vmem:[%s4563_s9 + $0x18] sm:$0xff] }
0x20a0   :  { %3291 = vrcp.f32 %v2302_v5  ;;  %v3104_v5 = vpack.c.bf16 %v2566_v58, %v2565_v63 }
0x20aa   :  { %v3292_v10 = vpop.eup %3291 }
0x20ab   :  { %v2313_v2 = vmul.f32 %v3292_v10, %v2311_v27 }
0x210f   :  { %v2316_v30 = vpop.permute.xlu1 %2315 }
0x2110   :  { %v2318_v9 = vmul.f32 %v3292_v10, %v2316_v30  ;;  %v2567_v10 = vld [vmem:[%s4563_s9 + $0x20] sm:$0xff]  ;;  %v2568_v30 = vld [vmem:[%s4563_s9 + $0x28] sm:$0xff] }
0x2112   :  { %2320 = vrot.lane.b32.xlu1 %v2318_v9, %s3400_s5  ;;  %v3107_v9 = vpack.c.bf16 %v2568_v30, %v2567_v10 }
0x2184   :  { %v2321_v48 = vpop.permute.xlu1 %2320 }
0x2185   :  { %v2323_v44 = vadd.f32 %v2321_v48, %v2313_v2  ;;  %v2569_v48 = vld [vmem:[%s4563_s9 + $0x30] sm:$0xff] }
0x2187   :  { %3293 = vtanh.f32 %v2323_v44  ;;  %2332 = vrot.lane.b32.xlu1 %v2323_v44, %s3400_s5  ;;  %v2570_v44 = vld [vmem:[%s4563_s9 + $0x38] sm:$0xff] }
0x2188   :  { %3295 = vpow2.f32 %v2730_v53  ;;  %v3110_v53 = vpack.c.bf16 %v2570_v44, %v2569_v48 }
0x2191   :  { %v3294_v45 = vpop.eup %3293 }
0x2192   :  { %2326 = vrot.lane.b32.xlu0 %v3294_v45, %s3400_s5  ;;  %v3296_v15 = vpop.eup %3295 }
0x2193   :  { %v2303_v55 = vadd.f32 1.0, %v3296_v15 }
0x2195   :  { %3297 = vrcp.f32 %v2303_v55 }
0x219f   :  { %v3298_v43 = vpop.eup %3297 }
0x21f9   :  { %v2333_v6 = vpop.permute.xlu1 %2332 }
0x21fa   :  { %v2335_v17 = vsel %vm4029_vm3, %v2333_v6, %v2219_v51 }
0x21fb   :  { %2426 = vrot.lane.b32.xlu1 %v2335_v17, %s3400_s5 }
0x2204   :  { %v2327_v24 = vpop.permute.xlu0 %2326 }
0x2205   :  { %v2329_v42 = vmul.f32 %v3298_v43, %v2327_v24 }
0x2207   :  { %v2330_v12 = vsel %vm4029_vm3, %v2329_v42, %v2214_v22 }
0x2208   :  { %2731 = vmatmul.mubr.msk.f32.vlgmr.msra.gmra.mrb[36].mxu0 %vm514_vm14, %v2330_v12 }
0x2209   :  { %2805 = vmatprep.mubr.msk.f32.mxu0 %vm3409_vm6, %v3399_v1  ;;  %v2737_v1 = vld [vmem:[%s4564_s10] ss:$0 sm:$0xff] }
0x226d   :  { %v2427_v11 = vpop.permute.xlu1 %2426 }
0x22db   :  { %v2405_v33 = vpop.f32.mrb[36].mxu0 }
0x22dc   :  { %v2410_v8 = vadd.f32 %v2405_v33, %v1627_v36  ;;  %v2407_v18 = vpop.f32.mrb[37].mxu0 }
0x22dd   :  { %v2411_v20 = vadd.f32 %v2407_v18, %v1628_v0 }
0x22de   :  { %v2732_v28 = vmul.f32 -1.442695, %v2410_v8 }
0x22df   :  { %3299 = vtanh.f32 %v2411_v20  ;;  %v2733_v13 = vmul.f32 -1.442695, %v2411_v20 }
0x22e0   :  { %3301 = vpow2.f32 %v2732_v28 }
0x22e9   :  { %v3300_v57 = vpop.eup %3299 }
0x22ea   :  { %2431 = vrot.lane.b32.xlu0 %v3300_v57, %s3400_s5  ;;  %v3302_v29 = vpop.eup %3301 }
0x22eb   :  { %v2418_v59 = vadd.f32 1.0, %v3302_v29 }
0x22ed   :  { %3303 = vrcp.f32 %v2418_v59 }
0x22f7   :  { %v3304_v26 = vpop.eup %3303 }
0x22f8   :  { %v2429_v36 = vmul.f32 %v3304_v26, %v2427_v11 }
0x235c   :  { %v2432_v3 = vpop.permute.xlu0 %2431 }
0x235d   :  { %v2434_v39 = vmul.f32 %v3304_v26, %v2432_v3 }
0x235f   :  { %2436 = vrot.lane.b32.xlu0 %v2434_v39, %s3400_s5 }
0x23d1   :  { %v2437_v61 = vpop.permute.xlu0 %2436 }
0x23d2   :  { %v2439_v4 = vadd.f32 %v2437_v61, %v2429_v36 }
0x23d4   :  { %3305 = vtanh.f32 %v2439_v4  ;;  %2448 = vrot.lane.b32.xlu0 %v2439_v4, %s3400_s5 }
0x23d5   :  { %3307 = vpow2.f32 %v2733_v13 }
0x23de   :  { %v3306_v46 = vpop.eup %3305 }
0x23df   :  { %2442 = vrot.lane.b32.xlu1 %v3306_v46, %s3400_s5  ;;  %v3308_v0 = vpop.eup %3307 }
0x23e0   :  { %v2419_v23 = vadd.f32 1.0, %v3308_v0 }
0x23e2   :  { %3309 = vrcp.f32 %v2419_v23 }
0x23ec   :  { %v3310_v56 = vpop.eup %3309 }
0x2446   :  { %v2449_v40 = vpop.permute.xlu0 %2448 }
0x2447   :  { %v2451_v35 = vsel %vm4070_vm4, %v2449_v40, %v2335_v17 }
0x2448   :  { %2542 = vrot.lane.b32.xlu0 %v2451_v35, %s3400_s5 }
0x2451   :  { %v2443_v60 = vpop.permute.xlu1 %2442 }
0x2452   :  { %v2445_v51 = vmul.f32 %v3310_v56, %v2443_v60 }
0x2454   :  { %v2446_v31 = vsel %vm4070_vm4, %v2445_v51, %v2330_v12 }
0x2455   :  { %2734 = vmatmul.mubr.msk.f32.vlgmr.msra.gmra.mrb[32].mxu1 %vm514_vm14, %v2446_v31 }
0x24ba   :  { %v2543_v27 = vpop.permute.xlu0 %2542 }
0x2528   :  { %v2521_v38 = vpop.f32.mrb[32].mxu1 }
0x2529   :  { %v2526_v49 = vadd.f32 %v2521_v38, %v1629_v62  ;;  %v2523_v22 = vpop.f32.mrb[33].mxu1  ;;  %v3101_v62 = vpack.c.bf16 %v2564_v54, %v2563_v50 }
0x252a   :  { %v2527_v14 = vadd.f32 %v2523_v22, %v4582_v21 }
0x252b   :  { %v2735_v41 = vmul.f32 -1.442695, %v2526_v49  ;;  %3102 = vmatpush3.bf16.msra.mxu0 %v3101_v62 }
0x252c   :  { %3311 = vtanh.f32 %v2527_v14  ;;  %3103 = vmatprep.subr.bf16.mxu0 %v3408_v52  ;;  %v2736_v6 = vmul.f32 -1.442695, %v2527_v14 }
0x252d   :  { %3313 = vpow2.f32 %v2735_v41 }
0x252f   :  { %3105 = vmatpush3.bf16.msra.mxu0 %v3104_v5 }
0x2530   :  { %3106 = vmatprep.subr.bf16.mxu0 %v3408_v52 }
0x2533   :  { %3108 = vmatpush3.bf16.msra.mxu0 %v3107_v9 }
0x2534   :  { %3109 = vmatprep.subr.bf16.mxu0 %v3408_v52 }
0x2536   :  { %v3312_v7 = vpop.eup %3311 }
0x2537   :  { %2547 = vrot.lane.b32.xlu1 %v3312_v7, %s3400_s5  ;;  %v3314_v19 = vpop.eup %3313  ;;  %3111 = vmatpush3.bf16.msra.mxu0 %v3110_v53 }
0x2538   :  { %v2534_v32 = vadd.f32 1.0, %v3314_v19 }
0x253a   :  { %3315 = vrcp.f32 %v2534_v32 }
0x2544   :  { %v3316_v47 = vpop.eup %3315 }
0x2545   :  { %v2545_v2 = vmul.f32 %v3316_v47, %v2543_v27 }
0x25a9   :  { %v2548_v25 = vpop.permute.xlu1 %2547 }
0x25aa   :  { %v2550_v16 = vmul.f32 %v3316_v47, %v2548_v25 }
0x25ac   :  { %2552 = vrot.lane.b32.xlu1 %v2550_v16, %s3400_s5 }
0x261e   :  { %v2553_v45 = vpop.permute.xlu1 %2552 }
0x261f   :  { %v2555_v15 = vadd.f32 %v2553_v45, %v2545_v2 }
0x2621   :  { %3317 = vtanh.f32 %v2555_v15 }
0x2622   :  { %3319 = vpow2.f32 %v2736_v6 }
0x262b   :  { %v3318_v55 = vpop.eup %3317 }
0x262c   :  { %2558 = vrot.lane.b32.xlu0 %v3318_v55, %s3400_s5  ;;  %v3320_v17 = vpop.eup %3319 }
0x262d   :  { %v2535_v43 = vadd.f32 1.0, %v3320_v17 }
0x262f   :  { %3321 = vrcp.f32 %v2535_v43 }
0x2639   :  { %v3322_v24 = vpop.eup %3321 }
0x269e   :  { %v2559_v42 = vpop.permute.xlu0 %2558 }
0x269f   :  { %v2561_v12 = vmul.f32 %v3322_v24, %v2559_v42 }
0x26a1   :  { %v2562_v33 = vsel %vm126_vm5, %v2561_v12, %v2446_v31 }
0x26a2   :  { %2806 = vmatmul.mubr.msk.f32.vlgmr.msra.gmra.mrb[38].mxu0 %vm514_vm14, %v2562_v33 }
0x2775   :  { %v2647_v8 = vpop.f32.mrb[38].mxu0 }
0x2776   :  { %v2648_v18 = vadd.f32 %v2737_v1, %v2647_v8  ;;  %v2807_v20 = vpop.f32.mrb[39].mxu0 }
0x2778   :  { %2652 = vst.msk [vmem:[%s4565_s11] sm:$0xff] %vm2651_vm7, %v2648_v18 }
0x2779   :  { %2657 = vsyncpa [#allocation3], 1 }
0x277a   :  { %2658 = vsyncpa [#allocation5], 1 }

</bundles_post_ra>
